<compile_context>
chip_gen: v6e
topology: v6e:2x2x1
jax: 0.10.0
libtpu: 0.0.40
codegen_flags: <defaults>
</compile_context>

<pallas_src>
import functools
import math

import numpy as np
import jax
import jax.numpy as jnp
from jax.experimental import pallas as pl
from jax.experimental.pallas import tpu as pltpu


# ------------------------------- kernels -----------------------------------

def _sigmoid(z):
    return 1.0 / (1.0 + jnp.exp(-z))


def _mblosa_fused_kernel(x_ref, xmask_ref, hmask_ref, omask_ref, seg_ref, rep_ref,
                         w_ref, b_ref, u_ref):
    """One grid step = Gb consecutive attention blocks (TR = Gb*r token rows).

    x_ref     : (TR, d)   raw word vectors (zero rows where the sequence was padded)
    xmask_ref : (TR, d)   1.0 for real tokens (t < n), 0.0 for padding rows
    hmask_ref : (TR, d)   1.0 for in-block rows that have a valid mSA target
    omask_ref : (Gb, d)   1.0 for blocks that have a valid inter-block target
    seg_ref   : (Gb, TR)  0/1 segment-sum matrix   (seg @ rows  -> per-block sum)
    rep_ref   : (TR, Gb)  0/1 broadcast matrix     (rep @ blocks -> per-row copy)
    w_ref     : (11, d, d) stacked weight matrices, b_ref: (6, d) stacked biases
    u_ref     : (TR, d)   fused mBloSA output rows
    """
    f32 = jnp.float32
    x = x_ref[...].astype(f32)
    seg = seg_ref[...]
    rep = rep_ref[...]

    fc_w, s2t_w1, s2t_w = w_ref[0], w_ref[1], w_ref[2]
    g_w1, g_w2 = w_ref[3], w_ref[4]
    f_w1x, f_w1h, f_w1e = w_ref[5], w_ref[6], w_ref[7]
    f_w2x, f_w2h, f_w2e = w_ref[8], w_ref[9], w_ref[10]
    b = b_ref[...]
    fc_b, s2t_b1, s2t_b = b[0:1], b[1:2], b[2:3]
    g_b, f_b1, f_b2 = b[3:4], b[4:5], b[5:6]

    # (1) leading fc + ReLU; padded tokens forced back to exact zero
    xin = jnp.maximum(jnp.dot(x, fc_w, preferred_element_type=f32) + fc_b, 0.0)
    xin = xin * xmask_ref[...]

    # (2) intra-block mSA == zero the one row with no valid target (header note)
    h = xin * hmask_ref[...]

    # (3) per-block source2token self-attention -> v : (Gb, d)
    f1 = jnp.maximum(jnp.dot(h, s2t_w1, preferred_element_type=f32) + s2t_b1, 0.0)
    logits = jnp.dot(f1, s2t_w, preferred_element_type=f32) + s2t_b
    # softmax over the r rows of each block; shift by a per-column tile max
    # (softmax is shift-invariant) so no reshape / per-group max is needed.
    p = jnp.exp(logits - jnp.max(logits, axis=0, keepdims=True))
    denom = jnp.dot(seg, p, preferred_element_type=f32)           # (Gb, d)
    num = jnp.dot(seg, p * h, preferred_element_type=f32)         # (Gb, d)
    v = num / denom

    # (4) inter-block mSA (== block mask) + sigmoid gate -> e : (Gb, d)
    o = v * omask_ref[...]
    g = _sigmoid(jnp.dot(o, g_w1, preferred_element_type=f32)
                 + jnp.dot(v, g_w2, preferred_element_type=f32) + g_b)
    e = g * o + (1.0 - g) * v

    # (5) fusion gate over token rows.  f_W1/f_W2 are pre-split into the x / h / E
    #     column groups, and E (= e repeated r times) only enters through e @ W,
    #     so the repeat is a (TR, Gb) @ (Gb, d) broadcast matmul — no HBM concat
    #     or repeat is ever materialised.
    ew1 = jnp.dot(rep, jnp.dot(e, f_w1e, preferred_element_type=f32),
                  preferred_element_type=f32)                     # (TR, d)
    ew2 = jnp.dot(rep, jnp.dot(e, f_w2e, preferred_element_type=f32),
                  preferred_element_type=f32)
    fus = jnp.maximum(jnp.dot(xin, f_w1x, preferred_element_type=f32)
                      + jnp.dot(h, f_w1h, preferred_element_type=f32)
                      + ew1 + f_b1, 0.0)
    gate = _sigmoid(jnp.dot(xin, f_w2x, preferred_element_type=f32)
                    + jnp.dot(h, f_w2h, preferred_element_type=f32)
                    + ew2 + f_b2)
    u_ref[...] = (gate * fus + (1.0 - gate) * xin).astype(u_ref.dtype)


def _s2t_kernel(x_ref, seg_ref, w1_ref, b1_ref, w_ref, b_ref, o_ref):
    """source2token self-attention over n rows of each of Bb sequences.

    x_ref: (Bb*n, H) rows, seg_ref: (Bb, Bb*n), output o_ref: (Bb, H).
    """
    f32 = jnp.float32
    x = x_ref[...].astype(f32)
    seg = seg_ref[...]
    f = jnp.maximum(jnp.dot(x, w1_ref[...], preferred_element_type=f32) + b1_ref[...], 0.0)
    logits = jnp.dot(f, w_ref[...], preferred_element_type=f32) + b_ref[...]
    p = jnp.exp(logits - jnp.max(logits, axis=0, keepdims=True))   # shift-invariant
    denom = jnp.dot(seg, p, preferred_element_type=f32)            # (Bb, H)
    num = jnp.dot(seg, p * x, preferred_element_type=f32)          # (Bb, H)
    o_ref[...] = (num / denom).astype(o_ref.dtype)


# ------------------------------- helpers ------------------------------------

def _round_up(a, m):
    return -(-a // m) * m


def _choose_tile(count, target):
    """Return (tile, padded_count): padded_count % tile == 0 and either
    tile == padded_count (single full block) or tile % 8 == 0 (sublane aligned)."""
    if count <= target:
        return count, count
    tile = max(8, (target // 8) * 8)
    return tile, _round_up(count, tile)


def _segment_matrix(num_groups, group_len):
    """(num_groups, num_groups*group_len) 0/1 matrix; row g sums the rows of group g."""
    m = np.zeros((num_groups, num_groups * group_len), np.float32)
    for g in range(num_groups):
        m[g, g * group_len:(g + 1) * group_len] = 1.0
    return m


# ----------------------------- kernel wrappers -------------------------------

def mblosa_fused(x, fc_w, fc_b, p, r, fw, *, group_tile=64):
    """Fused fc(+ReLU) -> mBloSA forward.  x: (B, n, d) raw input -> (B, n, d)."""
    B, n, d = x.shape
    bn = -(-n // r)                       # attention blocks per sequence
    G = B * bn                            # total blocks
    Gb, Gpad = _choose_tile(G, group_tile)
    TR = Gb * r                           # token rows per grid step
    rows = Gpad * r

    # blocked token rows: zero-pad each sequence to bn*r tokens, then to Gpad blocks
    xp = x if bn * r == n else jnp.pad(x, ((0, 0), (0, bn * r - n), (0, 0)))
    x2 = xp.reshape(B * bn * r, d)
    if Gpad != G:
        x2 = jnp.pad(x2, ((0, (Gpad - G) * r), (0, 0)))

    # host-precomputed masks / segment matrices (static shapes -> baked-in constants)
    tok = np.tile(np.arange(bn * r), B)               # token index within its sequence
    row = np.tile(np.arange(r), B * bn)               # row index within its block
    blk = np.tile(np.arange(bn), B)                   # block index within its sequence
    if fw:
        row_ok, blk_ok = row < (r - 1), blk != (bn - 1)
    else:
        row_ok, blk_ok = row > 0, blk != 0
    xmask = np.zeros((rows, d), np.float32)
    xmask[:G * r] = (tok < n).astype(np.float32)[:, None]
    hmask = np.zeros((rows, d), np.float32)
    hmask[:G * r] = row_ok.astype(np.float32)[:, None]
    omask = np.zeros((Gpad, d), np.float32)
    omask[:G] = blk_ok.astype(np.float32)[:, None]
    seg = _segment_matrix(Gb, r)                      # (Gb, TR)
    rep = np.ascontiguousarray(seg.T)                 # (TR, Gb)

    # stacked weights / biases: single small VMEM-resident blocks, DMA'd once
    w_stack = jnp.stack([fc_w, p["s2t_W1"], p["s2t_W"], p["g_W1"], p["g_W2"],
                         p["f_W1"][:d], p["f_W1"][d:2 * d], p["f_W1"][2 * d:],
                         p["f_W2"][:d], p["f_W2"][d:2 * d], p["f_W2"][2 * d:]])
    g_bias = p["g_b"] + p["g_W1_b"] + p["g_W2_b"]     # all biases applied once, pre-sigmoid
    b_stack = jnp.stack([fc_b, p["s2t_W1_b"], p["s2t_W_b"], g_bias,
                         p["f_W1_b"], p["f_W2_b"]])

    u = pl.pallas_call(
        _mblosa_fused_kernel,
        grid=(Gpad // Gb,),
        in_specs=[pl.BlockSpec((TR, d), lambda i: (i, 0)),
                  pl.BlockSpec((TR, d), lambda i: (i, 0)),
                  pl.BlockSpec((TR, d), lambda i: (i, 0)),
                  pl.BlockSpec((Gb, d), lambda i: (i, 0)),
                  pl.BlockSpec((Gb, TR), lambda i: (0, 0)),
                  pl.BlockSpec((TR, Gb), lambda i: (0, 0)),
                  pl.BlockSpec((11, d, d), lambda i: (0, 0, 0)),
                  pl.BlockSpec((6, d), lambda i: (0, 0))],
        out_specs=pl.BlockSpec((TR, d), lambda i: (i, 0)),
        out_shape=jax.ShapeDtypeStruct((rows, d), x.dtype),
        compiler_params=pltpu.CompilerParams(dimension_semantics=("parallel",)),
    )(x2, jnp.asarray(xmask), jnp.asarray(hmask), jnp.asarray(omask),
      jnp.asarray(seg), jnp.asarray(rep), w_stack, b_stack)

    return u[:G * r].reshape(B, bn * r, d)[:, :n, :]


def s2t_pallas(x, w1, b1, w, b, *, batch_tile=16):
    """source2token pooling: x (B, n, H) -> (B, H); softmax over the n axis."""
    B, n, H = x.shape
    Bb, Bpad = _choose_tile(B, batch_tile)
    x2 = x.reshape(B * n, H)
    if Bpad != B:
        x2 = jnp.pad(x2, ((0, (Bpad - B) * n), (0, 0)))
    seg = _segment_matrix(Bb, n)
    out = pl.pallas_call(
        _s2t_kernel,
        grid=(Bpad // Bb,),
        in_specs=[pl.BlockSpec((Bb * n, H), lambda i: (i, 0)),
                  pl.BlockSpec((Bb, Bb * n), lambda i: (0, 0)),
                  pl.BlockSpec((H, H), lambda i: (0, 0)),
                  pl.BlockSpec((1, H), lambda i: (0, 0)),
                  pl.BlockSpec((H, H), lambda i: (0, 0)),
                  pl.BlockSpec((1, H), lambda i: (0, 0))],
        out_specs=pl.BlockSpec((Bb, H), lambda i: (i, 0)),
        out_shape=jax.ShapeDtypeStruct((Bpad, H), x.dtype),
        compiler_params=pltpu.CompilerParams(dimension_semantics=("parallel",)),
    )(x2, jnp.asarray(seg), w1, b1.reshape(1, H), w, b.reshape(1, H))
    return out[:B]


# ----------------------------- model forward ---------------------------------

def biblosan_forward(x, params, r, c):
    """BiBloSAN: x (B, n, d) -> (B, 2d).

    `c` (the tanh clipping constant) only parameterises the mSA softmax, which in
    the reference forward pass reduces algebraically to a row/block mask (see the
    header note), so it has no effect on the output.
    """
    del c
    u_fw = mblosa_fused(x, params["fc_fw_W"], params["fc_fw_b"], params["fw"], r, fw=True)
    u_bw = mblosa_fused(x, params["fc_bw_W"], params["fc_bw_b"], params["bw"], r, fw=False)
    u_cat = jnp.concatenate([u_fw, u_bw], axis=2)                 # (B, n, 2d) — tiny
    return s2t_pallas(u_cat, params["s2t_W1"], params["s2t_W1_b"],
                      params["s2t_W"], params["s2t_W_b"])


# ----------------------------- parameter init --------------------------------

def _xavier(key, fan_in, fan_out):
    bound = math.sqrt(6.0 / (fan_in + fan_out))
    return jax.random.uniform(key, (fan_in, fan_out), jnp.float32, -bound, bound)


def init_mblosa_params(key, d):
    ks = jax.random.split(key, 8)
    z = jnp.zeros((d,), jnp.float32)
    return {
        "s2t_W1": _xavier(ks[0], d, d), "s2t_W1_b": z,
        "s2t_W": _xavier(ks[1], d, d), "s2t_W_b": z,
        # m_W1 / m_W2 / m_b exist in the reference module but provably do not
        # affect the forward output (see header note); kept for parameter parity.
        "m_W1": _xavier(ks[2], d, d), "m_W1_b": z,
        "m_W2": _xavier(ks[3], d, d), "m_W2_b": z,
        "m_b": z,
        "g_W1": _xavier(ks[4], d, d), "g_W1_b": z,
        "g_W2": _xavier(ks[5], d, d), "g_W2_b": z,
        "g_b": z,
        "f_W1": _xavier(ks[6], 3 * d, d), "f_W1_b": z,
        "f_W2": _xavier(ks[7], 3 * d, d), "f_W2_b": z,
    }


def init_params(key, d):
    ks = jax.random.split(key, 6)
    return {
        "fc_fw_W": _xavier(ks[0], d, d), "fc_fw_b": jnp.zeros((d,), jnp.float32),
        "fc_bw_W": _xavier(ks[1], d, d), "fc_bw_b": jnp.zeros((d,), jnp.float32),
        "s2t_W1": _xavier(ks[2], 2 * d, 2 * d), "s2t_W1_b": jnp.zeros((2 * d,), jnp.float32),
        "s2t_W": _xavier(ks[3], 2 * d, 2 * d), "s2t_W_b": jnp.zeros((2 * d,), jnp.float32),
        "fw": init_mblosa_params(ks[4], d),
        "bw": init_mblosa_params(ks[5], d),
    }


# TODO(synk): nn.Dropout is only attached when dropout=True in customizedLinear;
# the reference forward never enables it, so no dropout is applied here either.

if __name__ == "__main__":
    B, n, d = 2, 16, 32       # batch, seq_len, word_dim
    r = 4                     # args.r : attention block size
    c = 5.0                   # args.c : tanh clipping constant (no forward effect)

    x = jax.random.normal(jax.random.PRNGKey(0), (B, n, d), jnp.float32)
    params = init_params(jax.random.PRNGKey(1), d)

    fn = jax.jit(functools.partial(biblosan_forward, r=r, c=c))
    out = fn(x, params)
    jax.block_until_ready(out)

    assert out.shape == (B, 2 * d), out.shape
    assert bool(jnp.all(jnp.isfinite(out)))
    print("KERNEL_OK")
</pallas_src>

<mosaic_0001>
module attributes {stable_mosaic.version = 11 : i64} {
  func.func @_mblosa_fused_kernel(%arg0: i32, %arg1: memref<32x32xf32, #tpu.memory_space<vmem>>, %arg2: memref<32x32xf32, #tpu.memory_space<vmem>>, %arg3: memref<32x32xf32, #tpu.memory_space<vmem>>, %arg4: memref<8x32xf32, #tpu.memory_space<vmem>>, %arg5: memref<8x32xf32, #tpu.memory_space<vmem>>, %arg6: memref<32x8xf32, #tpu.memory_space<vmem>>, %arg7: memref<11x32x32xf32, #tpu.memory_space<vmem>>, %arg8: memref<6x32xf32, #tpu.memory_space<vmem>>, %arg9: memref<32x32xf32, #tpu.memory_space<vmem>>) attributes {dimension_semantics = [#tpu.dimension_semantics<parallel>], iteration_bounds = array<i64: 1>, scalar_prefetch = 0 : i64, scratch_operands = 0 : i64, tpu.core_type = #tpu.core_type<tc>, window_params = [{transform_indices = @transform_0, window_bounds = array<i64: 32, 32>}, {transform_indices = @transform_1, window_bounds = array<i64: 32, 32>}, {transform_indices = @transform_2, window_bounds = array<i64: 32, 32>}, {transform_indices = @transform_3, window_bounds = array<i64: 8, 32>}, {pipeline_mode = #tpu.pipeline_mode<synchronous>, transform_indices = @transform_4, window_bounds = array<i64: 8, 32>}, {pipeline_mode = #tpu.pipeline_mode<synchronous>, transform_indices = @transform_5, window_bounds = array<i64: 32, 8>}, {pipeline_mode = #tpu.pipeline_mode<synchronous>, transform_indices = @transform_6, window_bounds = array<i64: 11, 32, 32>}, {pipeline_mode = #tpu.pipeline_mode<synchronous>, transform_indices = @transform_7, window_bounds = array<i64: 6, 32>}, {transform_indices = @transform_8, window_bounds = array<i64: 32, 32>}]} {
    %c0 = arith.constant 0 : index
    %c0_0 = arith.constant 0 : index
    %0 = vector.load %arg1[%c0, %c0_0] : memref<32x32xf32, #tpu.memory_space<vmem>>, vector<32x32xf32>
    %c0_1 = arith.constant 0 : index
    %c0_2 = arith.constant 0 : index
    %1 = vector.load %arg5[%c0_1, %c0_2] : memref<8x32xf32, #tpu.memory_space<vmem>>, vector<8x32xf32>
    %c0_3 = arith.constant 0 : index
    %c0_4 = arith.constant 0 : index
    %2 = vector.load %arg6[%c0_3, %c0_4] : memref<32x8xf32, #tpu.memory_space<vmem>>, vector<32x8xf32>
    %c0_5 = arith.constant 0 : index
    %c0_6 = arith.constant 0 : index
    %c0_7 = arith.constant 0 : index
    %3 = vector.load %arg7[%c0_5, %c0_6, %c0_7] : memref<11x32x32xf32, #tpu.memory_space<vmem>>, vector<1x32x32xf32>
    %4 = vector.shape_cast %3 : vector<1x32x32xf32> to vector<32x32xf32>
    %c1 = arith.constant 1 : index
    %c0_8 = arith.constant 0 : index
    %c0_9 = arith.constant 0 : index
    %5 = vector.load %arg7[%c1, %c0_8, %c0_9] : memref<11x32x32xf32, #tpu.memory_space<vmem>>, vector<1x32x32xf32>
    %6 = vector.shape_cast %5 : vector<1x32x32xf32> to vector<32x32xf32>
    %c2 = arith.constant 2 : index
    %c0_10 = arith.constant 0 : index
    %c0_11 = arith.constant 0 : index
    %7 = vector.load %arg7[%c2, %c0_10, %c0_11] : memref<11x32x32xf32, #tpu.memory_space<vmem>>, vector<1x32x32xf32>
    %8 = vector.shape_cast %7 : vector<1x32x32xf32> to vector<32x32xf32>
    %c3 = arith.constant 3 : index
    %c0_12 = arith.constant 0 : index
    %c0_13 = arith.constant 0 : index
    %9 = vector.load %arg7[%c3, %c0_12, %c0_13] : memref<11x32x32xf32, #tpu.memory_space<vmem>>, vector<1x32x32xf32>
    %10 = vector.shape_cast %9 : vector<1x32x32xf32> to vector<32x32xf32>
    %c4 = arith.constant 4 : index
    %c0_14 = arith.constant 0 : index
    %c0_15 = arith.constant 0 : index
    %11 = vector.load %arg7[%c4, %c0_14, %c0_15] : memref<11x32x32xf32, #tpu.memory_space<vmem>>, vector<1x32x32xf32>
    %12 = vector.shape_cast %11 : vector<1x32x32xf32> to vector<32x32xf32>
    %c5 = arith.constant 5 : index
    %c0_16 = arith.constant 0 : index
    %c0_17 = arith.constant 0 : index
    %13 = vector.load %arg7[%c5, %c0_16, %c0_17] : memref<11x32x32xf32, #tpu.memory_space<vmem>>, vector<1x32x32xf32>
    %14 = vector.shape_cast %13 : vector<1x32x32xf32> to vector<32x32xf32>
    %c6 = arith.constant 6 : index
    %c0_18 = arith.constant 0 : index
    %c0_19 = arith.constant 0 : index
    %15 = vector.load %arg7[%c6, %c0_18, %c0_19] : memref<11x32x32xf32, #tpu.memory_space<vmem>>, vector<1x32x32xf32>
    %16 = vector.shape_cast %15 : vector<1x32x32xf32> to vector<32x32xf32>
    %c7 = arith.constant 7 : index
    %c0_20 = arith.constant 0 : index
    %c0_21 = arith.constant 0 : index
    %17 = vector.load %arg7[%c7, %c0_20, %c0_21] : memref<11x32x32xf32, #tpu.memory_space<vmem>>, vector<1x32x32xf32>
    %18 = vector.shape_cast %17 : vector<1x32x32xf32> to vector<32x32xf32>
    %c8 = arith.constant 8 : index
    %c0_22 = arith.constant 0 : index
    %c0_23 = arith.constant 0 : index
    %19 = vector.load %arg7[%c8, %c0_22, %c0_23] : memref<11x32x32xf32, #tpu.memory_space<vmem>>, vector<1x32x32xf32>
    %20 = vector.shape_cast %19 : vector<1x32x32xf32> to vector<32x32xf32>
    %c9 = arith.constant 9 : index
    %c0_24 = arith.constant 0 : index
    %c0_25 = arith.constant 0 : index
    %21 = vector.load %arg7[%c9, %c0_24, %c0_25] : memref<11x32x32xf32, #tpu.memory_space<vmem>>, vector<1x32x32xf32>
    %22 = vector.shape_cast %21 : vector<1x32x32xf32> to vector<32x32xf32>
    %c10 = arith.constant 10 : index
    %c0_26 = arith.constant 0 : index
    %c0_27 = arith.constant 0 : index
    %23 = vector.load %arg7[%c10, %c0_26, %c0_27] : memref<11x32x32xf32, #tpu.memory_space<vmem>>, vector<1x32x32xf32>
    %24 = vector.shape_cast %23 : vector<1x32x32xf32> to vector<32x32xf32>
    %c0_28 = arith.constant 0 : index
    %c0_29 = arith.constant 0 : index
    %25 = vector.load %arg8[%c0_28, %c0_29] : memref<6x32xf32, #tpu.memory_space<vmem>>, vector<6x32xf32>
    %26 = vector.extract_strided_slice %25 {offsets = [0, 0], sizes = [1, 32], strides = [1, 1]} : vector<6x32xf32> to vector<1x32xf32>
    %27 = vector.extract_strided_slice %25 {offsets = [1, 0], sizes = [1, 32], strides = [1, 1]} : vector<6x32xf32> to vector<1x32xf32>
    %28 = vector.extract_strided_slice %25 {offsets = [2, 0], sizes = [1, 32], strides = [1, 1]} : vector<6x32xf32> to vector<1x32xf32>
    %29 = vector.extract_strided_slice %25 {offsets = [3, 0], sizes = [1, 32], strides = [1, 1]} : vector<6x32xf32> to vector<1x32xf32>
    %30 = vector.extract_strided_slice %25 {offsets = [4, 0], sizes = [1, 32], strides = [1, 1]} : vector<6x32xf32> to vector<1x32xf32>
    %31 = vector.extract_strided_slice %25 {offsets = [5, 0], sizes = [1, 32], strides = [1, 1]} : vector<6x32xf32> to vector<1x32xf32>
    %cst = arith.constant dense<0.000000e+00> : vector<32x32xf32>
    %32 = tpu.matmul %0, %4, %cst {dimension_numbers = #tpu.dot_dimension_numbers<[1], [0], [0], [1], [0, 0, 1, 1], [], []>} : vector<32x32xf32>, vector<32x32xf32>, vector<32x32xf32> -> vector<32x32xf32>
    %33 = vector.broadcast %26 : vector<1x32xf32> to vector<32x32xf32>
    %34 = arith.addf %32, %33 : vector<32x32xf32>
    %cst_30 = arith.constant 0.000000e+00 : f32
    %35 = vector.broadcast %cst_30 : f32 to vector<32x32xf32>
    %36 = arith.maximumf %34, %35 : vector<32x32xf32>
    %c0_31 = arith.constant 0 : index
    %c0_32 = arith.constant 0 : index
    %37 = vector.load %arg2[%c0_31, %c0_32] : memref<32x32xf32, #tpu.memory_space<vmem>>, vector<32x32xf32>
    %38 = arith.mulf %36, %37 : vector<32x32xf32>
    %c0_33 = arith.constant 0 : index
    %c0_34 = arith.constant 0 : index
    %39 = vector.load %arg3[%c0_33, %c0_34] : memref<32x32xf32, #tpu.memory_space<vmem>>, vector<32x32xf32>
    %40 = arith.mulf %38, %39 : vector<32x32xf32>
    %cst_35 = arith.constant dense<0.000000e+00> : vector<32x32xf32>
    %41 = tpu.matmul %40, %6, %cst_35 {dimension_numbers = #tpu.dot_dimension_numbers<[1], [0], [0], [1], [0, 0, 1, 1], [], []>} : vector<32x32xf32>, vector<32x32xf32>, vector<32x32xf32> -> vector<32x32xf32>
    %42 = vector.broadcast %27 : vector<1x32xf32> to vector<32x32xf32>
    %43 = arith.addf %41, %42 : vector<32x32xf32>
    %cst_36 = arith.constant 0.000000e+00 : f32
    %44 = vector.broadcast %cst_36 : f32 to vector<32x32xf32>
    %45 = arith.maximumf %43, %44 : vector<32x32xf32>
    %cst_37 = arith.constant dense<0.000000e+00> : vector<32x32xf32>
    %46 = tpu.matmul %45, %8, %cst_37 {dimension_numbers = #tpu.dot_dimension_numbers<[1], [0], [0], [1], [0, 0, 1, 1], [], []>} : vector<32x32xf32>, vector<32x32xf32>, vector<32x32xf32> -> vector<32x32xf32>
    %47 = vector.broadcast %28 : vector<1x32xf32> to vector<32x32xf32>
    %48 = arith.addf %46, %47 : vector<32x32xf32>
    %cst_38 = arith.constant dense<0xFF800000> : vector<32xf32>
    %49 = vector.multi_reduction <maximumf>, %48, %cst_38 [0] : vector<32x32xf32> to vector<32xf32>
    %50 = vector.shape_cast %49 : vector<32xf32> to vector<1x32xf32>
    %51 = vector.broadcast %50 : vector<1x32xf32> to vector<32x32xf32>
    %52 = arith.subf %48, %51 : vector<32x32xf32>
    %53 = math.exp %52 : vector<32x32xf32>
    %cst_39 = arith.constant dense<0.000000e+00> : vector<8x32xf32>
    %54 = tpu.matmul %1, %53, %cst_39 {dimension_numbers = #tpu.dot_dimension_numbers<[1], [0], [0], [1], [0, 0, 1, 1], [], []>} : vector<8x32xf32>, vector<32x32xf32>, vector<8x32xf32> -> vector<8x32xf32>
    %55 = arith.mulf %53, %40 : vector<32x32xf32>
    %cst_40 = arith.constant dense<0.000000e+00> : vector<8x32xf32>
    %56 = tpu.matmul %1, %55, %cst_40 {dimension_numbers = #tpu.dot_dimension_numbers<[1], [0], [0], [1], [0, 0, 1, 1], [], []>} : vector<8x32xf32>, vector<32x32xf32>, vector<8x32xf32> -> vector<8x32xf32>
    %57 = arith.divf %56, %54 : vector<8x32xf32>
    %c0_41 = arith.constant 0 : index
    %c0_42 = arith.constant 0 : index
    %58 = vector.load %arg4[%c0_41, %c0_42] : memref<8x32xf32, #tpu.memory_space<vmem>>, vector<8x32xf32>
    %59 = arith.mulf %57, %58 : vector<8x32xf32>
    %cst_43 = arith.constant dense<0.000000e+00> : vector<8x32xf32>
    %60 = tpu.matmul %59, %10, %cst_43 {dimension_numbers = #tpu.dot_dimension_numbers<[1], [0], [0], [1], [0, 0, 1, 1], [], []>} : vector<8x32xf32>, vector<32x32xf32>, vector<8x32xf32> -> vector<8x32xf32>
    %cst_44 = arith.constant dense<0.000000e+00> : vector<8x32xf32>
    %61 = tpu.matmul %57, %12, %cst_44 {dimension_numbers = #tpu.dot_dimension_numbers<[1], [0], [0], [1], [0, 0, 1, 1], [], []>} : vector<8x32xf32>, vector<32x32xf32>, vector<8x32xf32> -> vector<8x32xf32>
    %62 = arith.addf %60, %61 : vector<8x32xf32>
    %63 = vector.broadcast %29 : vector<1x32xf32> to vector<8x32xf32>
    %64 = arith.addf %62, %63 : vector<8x32xf32>
    %cst_45 = arith.constant 0.000000e+00 : f32
    %65 = vector.broadcast %cst_45 : f32 to vector<8x32xf32>
    %66 = arith.subf %65, %64 : vector<8x32xf32>
    %67 = math.exp %66 : vector<8x32xf32>
    %cst_46 = arith.constant 1.000000e+00 : f32
    %68 = vector.broadcast %cst_46 : f32 to vector<8x32xf32>
    %69 = arith.addf %68, %67 : vector<8x32xf32>
    %cst_47 = arith.constant 1.000000e+00 : f32
    %70 = vector.broadcast %cst_47 : f32 to vector<8x32xf32>
    %71 = arith.divf %70, %69 : vector<8x32xf32>
    %72 = arith.mulf %71, %59 : vector<8x32xf32>
    %cst_48 = arith.constant 1.000000e+00 : f32
    %73 = vector.broadcast %cst_48 : f32 to vector<8x32xf32>
    %74 = arith.subf %73, %71 : vector<8x32xf32>
    %75 = arith.mulf %74, %57 : vector<8x32xf32>
    %76 = arith.addf %72, %75 : vector<8x32xf32>
    %cst_49 = arith.constant dense<0.000000e+00> : vector<8x32xf32>
    %77 = tpu.matmul %76, %18, %cst_49 {dimension_numbers = #tpu.dot_dimension_numbers<[1], [0], [0], [1], [0, 0, 1, 1], [], []>} : vector<8x32xf32>, vector<32x32xf32>, vector<8x32xf32> -> vector<8x32xf32>
    %cst_50 = arith.constant dense<0.000000e+00> : vector<32x32xf32>
    %78 = tpu.matmul %2, %77, %cst_50 {dimension_numbers = #tpu.dot_dimension_numbers<[1], [0], [0], [1], [0, 0, 1, 1], [], []>} : vector<32x8xf32>, vector<8x32xf32>, vector<32x32xf32> -> vector<32x32xf32>
    %cst_51 = arith.constant dense<0.000000e+00> : vector<8x32xf32>
    %79 = tpu.matmul %76, %24, %cst_51 {dimension_numbers = #tpu.dot_dimension_numbers<[1], [0], [0], [1], [0, 0, 1, 1], [], []>} : vector<8x32xf32>, vector<32x32xf32>, vector<8x32xf32> -> vector<8x32xf32>
    %cst_52 = arith.constant dense<0.000000e+00> : vector<32x32xf32>
    %80 = tpu.matmul %2, %79, %cst_52 {dimension_numbers = #tpu.dot_dimension_numbers<[1], [0], [0], [1], [0, 0, 1, 1], [], []>} : vector<32x8xf32>, vector<8x32xf32>, vector<32x32xf32> -> vector<32x32xf32>
    %cst_53 = arith.constant dense<0.000000e+00> : vector<32x32xf32>
    %81 = tpu.matmul %38, %14, %cst_53 {dimension_numbers = #tpu.dot_dimension_numbers<[1], [0], [0], [1], [0, 0, 1, 1], [], []>} : vector<32x32xf32>, vector<32x32xf32>, vector<32x32xf32> -> vector<32x32xf32>
    %cst_54 = arith.constant dense<0.000000e+00> : vector<32x32xf32>
    %82 = tpu.matmul %40, %16, %cst_54 {dimension_numbers = #tpu.dot_dimension_numbers<[1], [0], [0], [1], [0, 0, 1, 1], [], []>} : vector<32x32xf32>, vector<32x32xf32>, vector<32x32xf32> -> vector<32x32xf32>
    %83 = arith.addf %81, %82 : vector<32x32xf32>
    %84 = arith.addf %83, %78 : vector<32x32xf32>
    %85 = vector.broadcast %30 : vector<1x32xf32> to vector<32x32xf32>
    %86 = arith.addf %84, %85 : vector<32x32xf32>
    %cst_55 = arith.constant 0.000000e+00 : f32
    %87 = vector.broadcast %cst_55 : f32 to vector<32x32xf32>
    %88 = arith.maximumf %86, %87 : vector<32x32xf32>
    %cst_56 = arith.constant dense<0.000000e+00> : vector<32x32xf32>
    %89 = tpu.matmul %38, %20, %cst_56 {dimension_numbers = #tpu.dot_dimension_numbers<[1], [0], [0], [1], [0, 0, 1, 1], [], []>} : vector<32x32xf32>, vector<32x32xf32>, vector<32x32xf32> -> vector<32x32xf32>
    %cst_57 = arith.constant dense<0.000000e+00> : vector<32x32xf32>
    %90 = tpu.matmul %40, %22, %cst_57 {dimension_numbers = #tpu.dot_dimension_numbers<[1], [0], [0], [1], [0, 0, 1, 1], [], []>} : vector<32x32xf32>, vector<32x32xf32>, vector<32x32xf32> -> vector<32x32xf32>
    %91 = arith.addf %89, %90 : vector<32x32xf32>
    %92 = arith.addf %91, %80 : vector<32x32xf32>
    %93 = vector.broadcast %31 : vector<1x32xf32> to vector<32x32xf32>
    %94 = arith.addf %92, %93 : vector<32x32xf32>
    %cst_58 = arith.constant 0.000000e+00 : f32
    %95 = vector.broadcast %cst_58 : f32 to vector<32x32xf32>
    %96 = arith.subf %95, %94 : vector<32x32xf32>
    %97 = math.exp %96 : vector<32x32xf32>
    %cst_59 = arith.constant 1.000000e+00 : f32
    %98 = vector.broadcast %cst_59 : f32 to vector<32x32xf32>
    %99 = arith.addf %98, %97 : vector<32x32xf32>
    %cst_60 = arith.constant 1.000000e+00 : f32
    %100 = vector.broadcast %cst_60 : f32 to vector<32x32xf32>
    %101 = arith.divf %100, %99 : vector<32x32xf32>
    %102 = arith.mulf %101, %88 : vector<32x32xf32>
    %cst_61 = arith.constant 1.000000e+00 : f32
    %103 = vector.broadcast %cst_61 : f32 to vector<32x32xf32>
    %104 = arith.subf %103, %101 : vector<32x32xf32>
    %105 = arith.mulf %104, %38 : vector<32x32xf32>
    %106 = arith.addf %102, %105 : vector<32x32xf32>
    %c0_62 = arith.constant 0 : index
    %c0_63 = arith.constant 0 : index
    %107 = vector.load %arg9[%c0_62, %c0_63] : memref<32x32xf32, #tpu.memory_space<vmem>>, vector<32x32xf32>
    tpu.vector_store %arg9[%c0_62, %c0_63], %106 {strides = array<i32>} : memref<32x32xf32, #tpu.memory_space<vmem>>, vector<32x32xf32>,
    return
  }
  func.func @transform_0(%arg0: i32) -> (i32, i32) {
    %c0_i32 = arith.constant 0 : i32
    %c0_i32_0 = arith.constant 0 : i32
    return %arg0, %c0_i32 : i32, i32
  }
  func.func @transform_1(%arg0: i32) -> (i32, i32) {
    %c0_i32 = arith.constant 0 : i32
    %c0_i32_0 = arith.constant 0 : i32
    return %arg0, %c0_i32 : i32, i32
  }
  func.func @transform_2(%arg0: i32) -> (i32, i32) {
    %c0_i32 = arith.constant 0 : i32
    %c0_i32_0 = arith.constant 0 : i32
    return %arg0, %c0_i32 : i32, i32
  }
  func.func @transform_3(%arg0: i32) -> (i32, i32) {
    %c0_i32 = arith.constant 0 : i32
    %c0_i32_0 = arith.constant 0 : i32
    return %arg0, %c0_i32 : i32, i32
  }
  func.func @transform_4(%arg0: i32) -> (i32, i32) {
    %c0_i32 = arith.constant 0 : i32
    %c0_i32_0 = arith.constant 0 : i32
    %c0_i32_1 = arith.constant 0 : i32
    return %c0_i32, %c0_i32_0 : i32, i32
  }
  func.func @transform_5(%arg0: i32) -> (i32, i32) {
    %c0_i32 = arith.constant 0 : i32
    %c0_i32_0 = arith.constant 0 : i32
    %c0_i32_1 = arith.constant 0 : i32
    return %c0_i32, %c0_i32_0 : i32, i32
  }
  func.func @transform_6(%arg0: i32) -> (i32, i32, i32) {
    %c0_i32 = arith.constant 0 : i32
    %c0_i32_0 = arith.constant 0 : i32
    %c0_i32_1 = arith.constant 0 : i32
    %c0_i32_2 = arith.constant 0 : i32
    return %c0_i32, %c0_i32_0, %c0_i32_1 : i32, i32, i32
  }
  func.func @transform_7(%arg0: i32) -> (i32, i32) {
    %c0_i32 = arith.constant 0 : i32
    %c0_i32_0 = arith.constant 0 : i32
    %c0_i32_1 = arith.constant 0 : i32
    return %c0_i32, %c0_i32_0 : i32, i32
  }
  func.func @transform_8(%arg0: i32) -> (i32, i32) {
    %c0_i32 = arith.constant 0 : i32
    %c0_i32_0 = arith.constant 0 : i32
    return %arg0, %c0_i32 : i32, i32
  }
}

module attributes {stable_mosaic.version = 11 : i64} {
  func.func @_s2t_kernel(%arg0: i32, %arg1: memref<32x64xf32, #tpu.memory_space<vmem>>, %arg2: memref<2x32xf32, #tpu.memory_space<vmem>>, %arg3: memref<64x64xf32, #tpu.memory_space<vmem>>, %arg4: memref<1x64xf32, #tpu.memory_space<vmem>>, %arg5: memref<64x64xf32, #tpu.memory_space<vmem>>, %arg6: memref<1x64xf32, #tpu.memory_space<vmem>>, %arg7: memref<2x64xf32, #tpu.memory_space<vmem>>) attributes {dimension_semantics = [#tpu.dimension_semantics<parallel>], iteration_bounds = array<i64: 1>, scalar_prefetch = 0 : i64, scratch_operands = 0 : i64, tpu.core_type = #tpu.core_type<tc>, window_params = [{transform_indices = @transform_0, window_bounds = array<i64: 32, 64>}, {pipeline_mode = #tpu.pipeline_mode<synchronous>, transform_indices = @transform_1, window_bounds = array<i64: 2, 32>}, {pipeline_mode = #tpu.pipeline_mode<synchronous>, transform_indices = @transform_2, window_bounds = array<i64: 64, 64>}, {pipeline_mode = #tpu.pipeline_mode<synchronous>, transform_indices = @transform_3, window_bounds = array<i64: 1, 64>}, {pipeline_mode = #tpu.pipeline_mode<synchronous>, transform_indices = @transform_4, window_bounds = array<i64: 64, 64>}, {pipeline_mode = #tpu.pipeline_mode<synchronous>, transform_indices = @transform_5, window_bounds = array<i64: 1, 64>}, {transform_indices = @transform_6, window_bounds = array<i64: 2, 64>}]} {
    %c0 = arith.constant 0 : index
    %c0_0 = arith.constant 0 : index
    %0 = vector.load %arg1[%c0, %c0_0] : memref<32x64xf32, #tpu.memory_space<vmem>>, vector<32x64xf32>
    %c0_1 = arith.constant 0 : index
    %c0_2 = arith.constant 0 : index
    %1 = vector.load %arg2[%c0_1, %c0_2] : memref<2x32xf32, #tpu.memory_space<vmem>>, vector<2x32xf32>
    %c0_3 = arith.constant 0 : index
    %c0_4 = arith.constant 0 : index
    %2 = vector.load %arg3[%c0_3, %c0_4] : memref<64x64xf32, #tpu.memory_space<vmem>>, vector<64x64xf32>
    %cst = arith.constant dense<0.000000e+00> : vector<32x64xf32>
    %3 = tpu.matmul %0, %2, %cst {dimension_numbers = #tpu.dot_dimension_numbers<[1], [0], [0], [1], [0, 0, 1, 1], [], []>} : vector<32x64xf32>, vector<64x64xf32>, vector<32x64xf32> -> vector<32x64xf32>
    %c0_5 = arith.constant 0 : index
    %c0_6 = arith.constant 0 : index
    %4 = vector.load %arg4[%c0_5, %c0_6] : memref<1x64xf32, #tpu.memory_space<vmem>>, vector<1x64xf32>
    %5 = vector.broadcast %4 : vector<1x64xf32> to vector<32x64xf32>
    %6 = arith.addf %3, %5 : vector<32x64xf32>
    %cst_7 = arith.constant 0.000000e+00 : f32
    %7 = vector.broadcast %cst_7 : f32 to vector<32x64xf32>
    %8 = arith.maximumf %6, %7 : vector<32x64xf32>
    %c0_8 = arith.constant 0 : index
    %c0_9 = arith.constant 0 : index
    %9 = vector.load %arg5[%c0_8, %c0_9] : memref<64x64xf32, #tpu.memory_space<vmem>>, vector<64x64xf32>
    %cst_10 = arith.constant dense<0.000000e+00> : vector<32x64xf32>
    %10 = tpu.matmul %8, %9, %cst_10 {dimension_numbers = #tpu.dot_dimension_numbers<[1], [0], [0], [1], [0, 0, 1, 1], [], []>} : vector<32x64xf32>, vector<64x64xf32>, vector<32x64xf32> -> vector<32x64xf32>
    %c0_11 = arith.constant 0 : index
    %c0_12 = arith.constant 0 : index
    %11 = vector.load %arg6[%c0_11, %c0_12] : memref<1x64xf32, #tpu.memory_space<vmem>>, vector<1x64xf32>
    %12 = vector.broadcast %11 : vector<1x64xf32> to vector<32x64xf32>
    %13 = arith.addf %10, %12 : vector<32x64xf32>
    %cst_13 = arith.constant dense<0xFF800000> : vector<64xf32>
    %14 = vector.multi_reduction <maximumf>, %13, %cst_13 [0] : vector<32x64xf32> to vector<64xf32>
    %15 = vector.shape_cast %14 : vector<64xf32> to vector<1x64xf32>
    %16 = vector.broadcast %15 : vector<1x64xf32> to vector<32x64xf32>
    %17 = arith.subf %13, %16 : vector<32x64xf32>
    %18 = math.exp %17 : vector<32x64xf32>
    %cst_14 = arith.constant dense<0.000000e+00> : vector<2x64xf32>
    %19 = tpu.matmul %1, %18, %cst_14 {dimension_numbers = #tpu.dot_dimension_numbers<[1], [0], [0], [1], [0, 0, 1, 1], [], []>} : vector<2x32xf32>, vector<32x64xf32>, vector<2x64xf32> -> vector<2x64xf32>
    %20 = arith.mulf %18, %0 : vector<32x64xf32>
    %cst_15 = arith.constant dense<0.000000e+00> : vector<2x64xf32>
    %21 = tpu.matmul %1, %20, %cst_15 {dimension_numbers = #tpu.dot_dimension_numbers<[1], [0], [0], [1], [0, 0, 1, 1], [], []>} : vector<2x32xf32>, vector<32x64xf32>, vector<2x64xf32> -> vector<2x64xf32>
    %22 = arith.divf %21, %19 : vector<2x64xf32>
    %c0_16 = arith.constant 0 : index
    %c0_17 = arith.constant 0 : index
    %23 = vector.load %arg7[%c0_16, %c0_17] : memref<2x64xf32, #tpu.memory_space<vmem>>, vector<2x64xf32>
    tpu.vector_store %arg7[%c0_16, %c0_17], %22 {strides = array<i32>} : memref<2x64xf32, #tpu.memory_space<vmem>>, vector<2x64xf32>,
    return
  }
  func.func @transform_0(%arg0: i32) -> (i32, i32) {
    %c0_i32 = arith.constant 0 : i32
    %c0_i32_0 = arith.constant 0 : i32
    return %arg0, %c0_i32 : i32, i32
  }
  func.func @transform_1(%arg0: i32) -> (i32, i32) {
    %c0_i32 = arith.constant 0 : i32
    %c0_i32_0 = arith.constant 0 : i32
    %c0_i32_1 = arith.constant 0 : i32
    return %c0_i32, %c0_i32_0 : i32, i32
  }
  func.func @transform_2(%arg0: i32) -> (i32, i32) {
    %c0_i32 = arith.constant 0 : i32
    %c0_i32_0 = arith.constant 0 : i32
    %c0_i32_1 = arith.constant 0 : i32
    return %c0_i32, %c0_i32_0 : i32, i32
  }
  func.func @transform_3(%arg0: i32) -> (i32, i32) {
    %c0_i32 = arith.constant 0 : i32
    %c0_i32_0 = arith.constant 0 : i32
    %c0_i32_1 = arith.constant 0 : i32
    return %c0_i32, %c0_i32_0 : i32, i32
  }
  func.func @transform_4(%arg0: i32) -> (i32, i32) {
    %c0_i32 = arith.constant 0 : i32
    %c0_i32_0 = arith.constant 0 : i32
    %c0_i32_1 = arith.constant 0 : i32
    return %c0_i32, %c0_i32_0 : i32, i32
  }
  func.func @transform_5(%arg0: i32) -> (i32, i32) {
    %c0_i32 = arith.constant 0 : i32
    %c0_i32_0 = arith.constant 0 : i32
    %c0_i32_1 = arith.constant 0 : i32
    return %c0_i32, %c0_i32_0 : i32, i32
  }
  func.func @transform_6(%arg0: i32) -> (i32, i32) {
    %c0_i32 = arith.constant 0 : i32
    %c0_i32_0 = arith.constant 0 : i32
    return %arg0, %c0_i32 : i32, i32
  }
}

</mosaic_0001>

<bundles_post_ra>
// kernel: biblosan_forward.5
= control target key start
LH: loop header
LB: loop body
LE: loop exit
PB: predicated region body
PF: predicated region fallthrough
CT: control target
= control target key end

     0   :  { %vm44_vm0 = vcmask 523264   ;;  %s744_s0 = inlined_call_operand.vmem [shape: f32[32,64], index: 0, kind: input, shape index: {}]   ;;  %s745_s1 = inlined_call_operand.vmem [shape: f32[2,32], index: 1, kind: input, shape index: {}]   ;;  %s746_s2 = inlined_call_operand.vmem [shape: f32[64,64], index: 2, kind: input, shape index: {}]   ;;  %s747_s3 = inlined_call_operand.vmem [shape: f32[1,64], index: 3, kind: input, shape index: {}]   ;;  %s748_s4 = inlined_call_operand.vmem [shape: f32[64,64], index: 4, kind: input, shape index: {}]   ;;  %s749_s5 = inlined_call_operand.vmem [shape: f32[1,64], index: 5, kind: input, shape index: {}]   ;;  %s750_s6 = inlined_call_operand.hbm [shape: f32[2,64], index: 6, kind: output, shape index: {}]  }
   0x1   :  { %v36_v0 = vld [vmem:[%s746_s2 + $0x38] sm:$0xff]  ;;  %v35_v1 = vld [vmem:[%s746_s2 + $0x30] sm:$0xff]  ;;  %v34_v2 = vld [vmem:[%s746_s2 + $0x28] sm:$0xff] }
   0x2   :  { %495 = vmatprep.subr.mxu0 %v36_v0  ;;  %v646_v3 = vld [vmem:[%s744_s0] sm:$0xff]  ;;  %v153_v5 = vld [vmem:[%s748_s4 + $0x38] sm:$0xff]  ;;  %v152_v6 = vld [vmem:[%s748_s4 + $0x30] sm:$0xff] }
   0x3   :  { %496 = vmatpush3.msra.mxu0 %v36_v0  ;;  %511 = vmatprep.mubr.msk.f32.mxu0 %vm44_vm0, %v646_v3  ;;  %v33_v4 = vld [vmem:[%s746_s2 + $0x20] sm:$0xff] }
   0x4   :  { %497 = vmatprep.subr.mxu0 %v35_v1  ;;  %517 = vmatprep.subr.mxu1 %v153_v5 }
   0x5   :  { %498 = vmatpush3.msra.mxu0 %v35_v1 }
   0x6   :  { %499 = vmatprep.subr.mxu0 %v34_v2 }
   0x7   :  { %11 = vsyncpa [#allocation3], 0  ;;  %500 = vmatpush3.msra.mxu0 %v34_v2  ;;  %v32_v7 = vld [vmem:[%s746_s2 + $0x18] sm:$0xff]  ;;  %518 = vmatpush3.msra.mxu1 %v153_v5  ;;  %v151_v8 = vld [vmem:[%s748_s4 + $0x28] sm:$0xff]  ;;  %v596_v33 = vmov 0.0   ;;  %vm597_vm1 = vmmov 0  }
   0x8   :  { %501 = vmatprep.subr.mxu0 %v33_v4  ;;  %519 = vmatprep.subr.mxu1 %v152_v6  ;;  %v31_v9 = vld [vmem:[%s746_s2 + $0x10] sm:$0xff]  ;;  %v150_v10 = vld [vmem:[%s748_s4 + $0x20] sm:$0xff]  ;;  %v30_v11 = vld [vmem:[%s746_s2 + $0x8] sm:$0xff]  ;;  %vm283_vm2 = vcmask 261120   ;;  %vm433_vm3 = vcmask 517120  }
   0x9   :  { %502 = vmatpush3.msra.mxu0 %v33_v4  ;;  %520 = vmatpush3.msra.mxu1 %v152_v6  ;;  %v29_v12 = vld [vmem:[%s746_s2] sm:$0xff]  ;;  %v680_v13 = vld [vmem:[%s744_s0 + $0x8] sm:$0xff]  ;;  %v685_v14 = vld [vmem:[%s744_s0 + $0x10] sm:$0xff] }
   0xa   :  { %503 = vmatprep.subr.mxu0 %v32_v7  ;;  %521 = vmatprep.subr.mxu1 %v151_v8  ;;  %v694_v15 = vld [vmem:[%s744_s0 + $0x18] sm:$0xff]  ;;  %v148_v17 = vld [vmem:[%s748_s4 + $0x10] sm:$0xff]  ;;  %v147_v18 = vld [vmem:[%s748_s4 + $0x8] sm:$0xff] }
   0xb   :  { %504 = vmatpush3.msra.mxu0 %v32_v7  ;;  %522 = vmatpush3.msra.mxu1 %v151_v8  ;;  %v149_v16 = vld [vmem:[%s748_s4 + $0x18] sm:$0xff]  ;;  %v146_v19 = vld [vmem:[%s748_s4] sm:$0xff] }
   0xc   :  { %505 = vmatprep.subr.mxu0 %v31_v9  ;;  %523 = vmatprep.subr.mxu1 %v150_v10  ;;  %v449_v20 = vld [vmem:[%s747_s3] ss:$0 sm:$0xff] }
   0xd   :  { %506 = vmatpush3.msra.mxu0 %v31_v9  ;;  %524 = vmatpush3.msra.mxu1 %v150_v10  ;;  %v454_v35 = vld [vmem:[%s749_s5] ss:$0 sm:$0xff] }
   0xe   :  { %507 = vmatprep.subr.mxu0 %v30_v11  ;;  %525 = vmatprep.subr.mxu1 %v149_v16  ;;  %v28_v8 = vld [vmem:[%s745_s1] sm:$0x3]  ;;  %s598_s1 = smov [#allocation2]  }
   0xf   :  { %508 = vmatpush3.msra.mxu0 %v30_v11  ;;  %526 = vmatpush3.msra.mxu1 %v149_v16  ;;  %s441_s14 = sshll.u32 %s598_s1, 4  ;;  %s442_s14 = int_to_ptr.vmem [resolvable:$true] %s441_s14 }
  0x10   :  { %509 = vmatprep.subr.mxu0 %v29_v12  ;;  %527 = vmatprep.subr.mxu1 %v148_v17  ;;  %s574_s15 = scalar_lea.vmem %s442_s14, 32  ;;  %p579_p1 = scmp.lt.s32.totalorder %s442_s14, %s442_s14 }
  0x11   :  { %510 = vmatpush3.msra.mxu0 %v29_v12  ;;  %528 = vmatpush3.msra.mxu1 %v148_v17  ;;  %p575_p0 = scmp.ne.s32.totalorder %s442_s14, %s574_s15  ;;  %p580_p2 = scmp.lt.s32.totalorder %s574_s15, %s574_s15 }
  0x12   :  { %512 = vmatmul.mubr.msk.f32.vlgmr.msra.gmra.mxu0 %vm44_vm0, %v680_v13  ;;  %529 = vmatprep.subr.mxu1 %v147_v18 }
  0x13   :  { %514 = vmatprep.mubr.msk.f32.mxu0 %vm44_vm0, %v685_v14  ;;  %530 = vmatpush3.msra.mxu1 %v147_v18  ;;  %p581_p3 = por %p580_p2, %p579_p1 }
  0x14   :  { %531 = vmatprep.subr.mxu1 %v146_v19  ;;  %539 = vmatprep.subr.mxu0 %v596_v33 }
  0x15   :  { %532 = vmatpush3.msra.mxu1 %v146_v19  ;;  %p582_p4 = pnand %p581_p3, %p575_p0 }
  0x16   :  { %515 = vmatmul.mubr.msk.f32.gmra.mxu0 %vm44_vm0, %v694_v15  ;;  %550 = vmatprep.subr.mxu1 %v596_v33 }
  0x17   :  { %547 = vmatprep.mubr.msk.f32.mxu0 %vm597_vm1, %v596_v33 }
  0xd2   :  { %v513_v21 = vpop.f32.mrf.mxu0 }
  0xd3   :  { %v129_v22 = vadd.f32 %v513_v21, %v449_v20 }
  0xd4   :  { %v123_v23 = vpop.f32.mrf.mxu0 }
  0xd5   :  { %v124_v24 = vadd.f32 %v449_v20, %v123_v23  ;;  %v143_v27 = vmax.f32 %v129_v22, 0.0 }
  0xd6   :  { %v516_v25 = vpop.f32.mrf.mxu0 }
  0xd7   :  { %v142_v26 = vmax.f32 %v124_v24, 0.0  ;;  %v139_v28 = vadd.f32 %v516_v25, %v449_v20 }
  0xd8   :  { %v133_v29 = vpop.f32.mrf.mxu0 }
  0xd9   :  { %v134_v30 = vadd.f32 %v449_v20, %v133_v29  ;;  %533 = vmatprep.mubr.msk.f32.mxu1 %vm44_vm0, %v142_v26  ;;  %v145_v32 = vmax.f32 %v139_v28, 0.0 }
  0xda   :  { %534 = vmatmul.mubr.msk.f32.vlgmr.msra.gmra.mxu1 %vm44_vm0, %v143_v27 }
  0xdb   :  { %v144_v31 = vmax.f32 %v134_v30, 0.0 }
  0xdd   :  { %536 = vmatprep.mubr.msk.f32.mxu1 %vm44_vm0, %v144_v31 }
  0xde   :  { %537 = vmatmul.mubr.msk.f32.gmra.mxu1 %vm44_vm0, %v145_v32 }
  0xdf   :  { %558 = vmatprep.mubr.msk.f32.mxu1 %vm597_vm1, %v596_v33 }
 0x19a   :  { %v535_v34 = vpop.f32.mrf.mxu1 }
 0x19b   :  { %v245_v39 = vadd.f32 %v535_v34, %v454_v35 }
 0x19c   :  { %v239_v36 = vpop.f32.mrf.mxu1 }
 0x19d   :  { %v240_v37 = vadd.f32 %v454_v35, %v239_v36  ;;  %v259_v44 = vsel %vm44_vm0, %v245_v39, -inf }
 0x19e   :  { %v538_v38 = vpop.f32.mrf.mxu1 }
 0x19f   :  { %v255_v40 = vadd.f32 %v538_v38, %v454_v35  ;;  %v258_v42 = vsel %vm44_vm0, %v240_v37, -inf }
 0x1a0   :  { %v249_v41 = vpop.f32.mrf.mxu1  ;;  %v262_v47 = vmax.f32 %v258_v42, %v259_v44 }
 0x1a1   :  { %v250_v43 = vadd.f32 %v454_v35, %v249_v41  ;;  %v261_v45 = vsel %vm44_vm0, %v255_v40, -inf }
 0x1a3   :  { %v260_v46 = vsel %vm44_vm0, %v250_v43, -inf }
 0x1a4   :  { %v263_v48 = vmax.f32 %v260_v46, %v261_v45 }
 0x1a6   :  { %v264_v49 = vmax.f32 %v262_v47, %v263_v48 }
 0x1a8   :  { %v265_v50 = vrot.slane %v264_v49, 4 }
 0x1aa   :  { %v266_v51 = vmax.f32 %v264_v49, %v265_v50 }
 0x1ac   :  { %v267_v52 = vrot.slane %v266_v51, 2 }
 0x1ae   :  { %v268_v53 = vmax.f32 %v266_v51, %v267_v52 }
 0x1b0   :  { %v269_v54 = vrot.slane %v268_v53, 1 }
 0x1b2   :  { %v270_v55 = vmax.f32 %v268_v53, %v269_v54 }
 0x1b4   :  { %v273_v56 = vsub.f32 %v250_v43, %v270_v55  ;;  %v274_v57 = vsub.f32 %v255_v40, %v270_v55  ;;  %v272_v58 = vsub.f32 %v245_v39, %v270_v55  ;;  %v271_v60 = vsub.f32 %v240_v37, %v270_v55 }
 0x1b6   :  { %v279_v59 = vmul.f32 1.442695, %v273_v56  ;;  %v281_v61 = vmul.f32 1.442695, %v274_v57  ;;  %v277_v62 = vmul.f32 1.442695, %v272_v58 }
 0x1b7   :  { %v275_v63 = vmul.f32 1.442695, %v271_v60 }
 0x1b8   :  { %564 = vpow2.f32 %v279_v59 }
 0x1b9   :  { %566 = vpow2.f32 %v281_v61 }
 0x1ba   :  { %568 = vpow2.f32 %v277_v62 }
 0x1bb   :  { %570 = vpow2.f32 %v275_v63 }
 0x1c5   :  { %v565_v0 = vpop.eup %564 }
 0x1c6   :  { %v567_v1 = vpop.eup %566  ;;  %v359_v5 = vmul.f32 %v565_v0, %v685_v14 }
 0x1c7   :  { %540 = vmatpush3.msra.mxu0 %v567_v1  ;;  %v360_v2 = vmul.f32 %v567_v1, %v694_v15  ;;  %v569_v4 = vpop.eup %568 }
 0x1c8   :  { %541 = vmatprep.subr.mxu0 %v596_v33  ;;  %v571_v6 = vpop.eup %570  ;;  %v358_v7 = vmul.f32 %v569_v4, %v680_v13 }
 0x1c9   :  { %542 = vmatpush3.msra.mxu0 %v565_v0  ;;  %551 = vmatpush3.msra.mxu1 %v360_v2  ;;  %v357_v9 = vmul.f32 %v571_v6, %v646_v3 }
 0x1ca   :  { %543 = vmatprep.subr.mxu0 %v596_v33  ;;  %552 = vmatprep.subr.mxu1 %v596_v33 }
 0x1cb   :  { %544 = vmatpush3.msra.mxu0 %v569_v4  ;;  %553 = vmatpush3.msra.mxu1 %v359_v5 }
 0x1cc   :  { %545 = vmatprep.subr.mxu0 %v596_v33  ;;  %554 = vmatprep.subr.mxu1 %v596_v33 }
 0x1cd   :  { %546 = vmatpush3.msra.mxu0 %v571_v6  ;;  %555 = vmatpush3.msra.mxu1 %v358_v7 }
 0x1ce   :  { %548 = vmatmul.mubr.msk.f32.vlgmr.msra.gmra.mxu0 %vm283_vm2, %v28_v8  ;;  %556 = vmatprep.subr.mxu1 %v596_v33 }
 0x1cf   :  { %557 = vmatpush3.msra.mxu1 %v357_v9 }
 0x1d0   :  { %559 = vmatmul.mubr.msk.f32.vlgmr.msra.gmra.mxu1 %vm283_vm2, %v28_v8 }
 0x28e   :  { %v353_v10 = vpop.f32.mrf.mxu0 }
 0x28f   :  { %572 = vrcp.f32 %v353_v10 }
 0x290   :  { %v549_v11 = vpop.f32.mrf.mxu0  ;;  %v427_v12 = vpop.f32.mrf.mxu1 }
 0x292   :  { %v560_v13 = vpop.f32.mrf.mxu1 }
 0x29c   :  { %v573_v14 = vpop.eup %572 }
 0x29d   :  { %v432_v15 = vmul.f32 %v573_v14, %v427_v12 }
 0x29f   :  { %434 = vst.msk [vmem:[#allocation2] sm:$0x3] %vm433_vm3, %v432_v15 }
 0x2a0   :  { %585 = shalt.err (!%p582_p4)
}
 0x2a1   :  { %444 = dma.vmem_to_hbm [thread:$0]  %s442_s14, 32, %s750_s6, [#allocation3]  }
 0x2a2   :  { %594 = dma.done.wait [#allocation3], 32  }
 0x2a3   :  { %595 = vsyncadd [#allocation3], 4294967264 }
 0x2a4   :  { %448 = vsyncpa [#allocation3], 1 }

// kernel: biblosan_forward.3
= control target key start
LH: loop header
LB: loop body
LE: loop exit
PB: predicated region body
PF: predicated region fallthrough
CT: control target
= control target key end

     0   :  { %vm97_vm0 = vcmask 261120   ;;  %v93_v12 = vlaneseq  ;;  %v1902_v63 = vmov 0.0   ;;  %vm1903_vm1 = vmmov 0   ;;  %s2312_s6 = inlined_call_operand.vmem [shape: f32[11,32,32], index: 6, kind: input, shape index: {}]   ;;  %s2313_s0 = inlined_call_operand.vmem [shape: f32[32,32], index: 0, kind: input, shape index: {}]   ;;  %s2314_s7 = inlined_call_operand.vmem [shape: f32[6,32], index: 7, kind: input, shape index: {}]   ;;  %s2315_s1 = inlined_call_operand.vmem [shape: f32[32,32], index: 1, kind: input, shape index: {}]   ;;  %s2316_s2 = inlined_call_operand.vmem [shape: f32[32,32], index: 2, kind: input, shape index: {}]   ;;  %s2317_s4 = inlined_call_operand.vmem [shape: f32[8,32], index: 4, kind: input, shape index: {}]   ;;  %s2318_s3 = inlined_call_operand.vmem [shape: f32[8,32], index: 3, kind: input, shape index: {}]   ;;  %s2319_s5 = inlined_call_operand.vmem [shape: f32[32,8], index: 5, kind: input, shape index: {}]   ;;  %s2320_s8 = inlined_call_operand.vmem [shape: f32[32,32], index: 8, kind: output, shape index: {}]  }
   0x1   :  { %v41_v0 = vld [vmem:[%s2312_s6 + $0x18] sm:$0xff]  ;;  %v40_v1 = vld [vmem:[%s2312_s6 + $0x10] sm:$0xff]  ;;  %v29_v2 = vld [vmem:[%s2313_s0] sm:$0xff]  ;;  %vm831_vm2 = vcmask 64512  }
   0x2   :  { %1690 = vmatprep.subr.mxu0 %v41_v0  ;;  %v39_v3 = vld [vmem:[%s2312_s6 + $0x8] sm:$0xff]  ;;  %1698 = vmatprep.mubr.msk.f32.mxu0 %vm97_vm0, %v29_v2  ;;  %v38_v4 = vld [vmem:[%s2312_s6] sm:$0xff]  ;;  %v31_v6 = vld [vmem:[%s2313_s0 + $0x10] sm:$0xff]  ;;  %v1989_v13 = vshrl.u32 %v93_v12, 7 }
   0x3   :  { %1691 = vmatpush3.msra.mxu0 %v41_v0  ;;  %v30_v5 = vld [vmem:[%s2313_s0 + $0x8] sm:$0xff]  ;;  %v32_v7 = vld [vmem:[%s2313_s0 + $0x18] sm:$0xff]  ;;  %v1514_v9 = vld [vmem:[%s2312_s6 + $0x30] sm:$0xff] }
   0x4   :  { %1692 = vmatprep.subr.mxu0 %v40_v1  ;;  %v1515_v8 = vld [vmem:[%s2312_s6 + $0x38] sm:$0xff]  ;;  %v1513_v10 = vld [vmem:[%s2312_s6 + $0x28] sm:$0xff]  ;;  %v1512_v11 = vld [vmem:[%s2312_s6 + $0x20] sm:$0xff]  ;;  %v95_v14 = vsub.s32 0, %v1989_v13  ;;  %v217_v49 = vsub.s32 1, %v1989_v13  ;;  %v322_v0 = vsub.s32 2, %v1989_v13 }
   0x5   :  { %1693 = vmatpush3.msra.mxu0 %v40_v1  ;;  %1704 = vmatprep.subr.mxu1 %v1515_v8  ;;  %v1995_v15 = vld [vmem:[%s2314_s7] sm:$0x3f]  ;;  %v200_v21 = vld [vmem:[%s2315_s1 + $0x8] sm:$0xff]  ;;  %v202_v32 = vld [vmem:[%s2315_s1 + $0x18] sm:$0xff] }
   0x6   :  { %1694 = vmatprep.subr.mxu0 %v39_v3  ;;  %1705 = vmatpush3.msra.mxu1 %v1515_v8  ;;  %v96_v16 = vrot.slane %v1995_v15, %v95_v14  ;;  %v199_v23 = vld [vmem:[%s2315_s1] sm:$0xff]  ;;  %v208_v34 = vld [vmem:[%s2316_s2 + $0x8] sm:$0xff]  ;;  %v201_v35 = vld [vmem:[%s2315_s1 + $0x10] sm:$0xff]  ;;  %v218_v50 = vrot.slane %v1995_v15, %v217_v49  ;;  %v323_v2 = vrot.slane %v1995_v15, %v322_v0 }
   0x7   :  { %1695 = vmatpush3.msra.mxu0 %v39_v3  ;;  %1706 = vmatprep.subr.mxu1 %v1514_v9  ;;  %v207_v29 = vld [vmem:[%s2316_s2] sm:$0xff]  ;;  %v209_v40 = vld [vmem:[%s2316_s2 + $0x10] sm:$0xff]  ;;  %v210_v42 = vld [vmem:[%s2316_s2 + $0x18] sm:$0xff] }
   0x8   :  { %1696 = vmatprep.subr.mxu0 %v38_v4  ;;  %1707 = vmatpush3.msra.mxu1 %v1514_v9  ;;  %v1519_v45 = vld [vmem:[%s2312_s6 + $0x58] sm:$0xff]  ;;  %v1518_v46 = vld [vmem:[%s2312_s6 + $0x50] sm:$0xff]  ;;  %v1517_v47 = vld [vmem:[%s2312_s6 + $0x48] sm:$0xff] }
   0x9   :  { %1697 = vmatpush3.msra.mxu0 %v38_v4  ;;  %1708 = vmatprep.subr.mxu1 %v1513_v10  ;;  %v1516_v48 = vld [vmem:[%s2312_s6 + $0x40] sm:$0xff] }
   0xa   :  { %1699 = vmatmul.mubr.msk.f32.vlgmr.msra.gmra.mxu0 %vm97_vm0, %v30_v5  ;;  %1709 = vmatpush3.msra.mxu1 %v1513_v10  ;;  %v595_v0 = vld [vmem:[%s2318_s3] sm:$0xff] }
   0xb   :  { %1701 = vmatprep.mubr.msk.f32.mxu0 %vm97_vm0, %v31_v6  ;;  %1710 = vmatprep.subr.mxu1 %v1512_v11 }
   0xc   :  { %1711 = vmatpush3.msra.mxu1 %v1512_v11  ;;  %1718 = vmatprep.subr.mxu0 %v1519_v45 }
   0xd   :  { %1719 = vmatpush3.msra.mxu0 %v1519_v45  ;;  %1732 = vmatprep.subr.mxu1 %v1902_v63 }
   0xe   :  { %1702 = vmatmul.mubr.msk.f32.gmra.mxu0 %vm97_vm0, %v32_v7  ;;  %1720 = vmatprep.subr.mxu0 %v1518_v46 }
   0xf   :  { %1721 = vmatpush3.msra.mxu0 %v1518_v46 }
  0x10   :  { %1722 = vmatprep.subr.mxu0 %v1517_v47 }
  0x11   :  { %1723 = vmatpush3.msra.mxu0 %v1517_v47 }
  0x12   :  { %1724 = vmatprep.subr.mxu0 %v1516_v48 }
  0x13   :  { %1725 = vmatpush3.msra.mxu0 %v1516_v48  ;;  %v33_v48 = vld [vmem:[%s2317_s4] sm:$0xff] }
  0x14   :  { %1743 = vmatprep.subr.mxu0 %v1902_v63 }
  0xca   :  { %v1700_v17 = vpop.f32.mrf.mxu0 }
  0xcb   :  { %v182_v18 = vadd.f32 %v1700_v17, %v96_v16 }
  0xcc   :  { %v176_v19 = vpop.f32.mrf.mxu0 }
  0xcd   :  { %v196_v20 = vmax.f32 %v182_v18, 0.0  ;;  %v177_v22 = vadd.f32 %v176_v19, %v96_v16 }
  0xce   :  { %v1703_v24 = vpop.f32.mrf.mxu0 }
  0xcf   :  { %v195_v25 = vmax.f32 %v177_v22, 0.0  ;;  %v192_v26 = vadd.f32 %v1703_v24, %v96_v16  ;;  %v2004_v27 = vmul.f32 %v200_v21, %v196_v20 }
  0xd0   :  { %v186_v28 = vpop.f32.mrf.mxu0 }
  0xd1   :  { %v2009_v30 = vmul.f32 %v199_v23, %v195_v25  ;;  %v198_v31 = vmax.f32 %v192_v26, 0.0  ;;  %v187_v33 = vadd.f32 %v186_v28, %v96_v16  ;;  %v2026_v39 = vmul.f32 %v208_v34, %v2004_v27 }
  0xd3   :  { %v197_v36 = vmax.f32 %v187_v33, 0.0  ;;  %v2021_v37 = vmul.f32 %v207_v29, %v2009_v30  ;;  %v2023_v38 = vmul.f32 %v202_v32, %v198_v31 }
  0xd5   :  { %v2031_v41 = vmul.f32 %v201_v35, %v197_v36  ;;  %1712 = vmatprep.mubr.msk.f32.mxu1 %vm97_vm0, %v2021_v37  ;;  %v2044_v44 = vmul.f32 %v210_v42, %v2023_v38 }
  0xd6   :  { %1713 = vmatmul.mubr.msk.f32.vlgmr.msra.gmra.mxu1 %vm97_vm0, %v2026_v39 }
  0xd7   :  { %v2041_v43 = vmul.f32 %v209_v40, %v2031_v41 }
  0xd9   :  { %1715 = vmatprep.mubr.msk.f32.mxu1 %vm97_vm0, %v2041_v43 }
  0xda   :  { %1716 = vmatmul.mubr.msk.f32.gmra.mxu1 %vm97_vm0, %v2044_v44 }
  0xdb   :  { %1740 = vmatprep.mubr.msk.f32.mxu1 %vm1903_vm1, %v1902_v63 }
 0x196   :  { %v1714_v51 = vpop.f32.mrf.mxu1 }
 0x197   :  { %v303_v52 = vadd.f32 %v1714_v51, %v218_v50  ;;  %v1526_v51 = vld [vmem:[%s2312_s6 + $0x90] sm:$0xff] }
 0x198   :  { %v297_v53 = vpop.f32.mrf.mxu1 }
 0x199   :  { %v298_v54 = vadd.f32 %v297_v53, %v218_v50  ;;  %v317_v57 = vmax.f32 %v303_v52, 0.0  ;;  %v1523_v52 = vld [vmem:[%s2312_s6 + $0x78] sm:$0xff]  ;;  %v1525_v53 = vld [vmem:[%s2312_s6 + $0x88] sm:$0xff] }
 0x19a   :  { %v1717_v55 = vpop.f32.mrf.mxu1 }
 0x19b   :  { %v316_v56 = vmax.f32 %v298_v54, 0.0  ;;  %v313_v58 = vadd.f32 %v1717_v55, %v218_v50  ;;  %v1522_v54 = vld [vmem:[%s2312_s6 + $0x70] sm:$0xff]  ;;  %v1524_v55 = vld [vmem:[%s2312_s6 + $0x80] sm:$0xff] }
 0x19c   :  { %v307_v59 = vpop.f32.mrf.mxu1 }
 0x19d   :  { %v308_v60 = vadd.f32 %v307_v59, %v218_v50  ;;  %1726 = vmatprep.mubr.msk.f32.mxu0 %vm97_vm0, %v316_v56  ;;  %v319_v62 = vmax.f32 %v313_v58, 0.0  ;;  %v1527_v50 = vld [vmem:[%s2312_s6 + $0x98] sm:$0xff]  ;;  %v1521_v56 = vld [vmem:[%s2312_s6 + $0x68] sm:$0xff] }
 0x19e   :  { %1727 = vmatmul.mubr.msk.f32.vlgmr.msra.gmra.mxu0 %vm97_vm0, %v317_v57  ;;  %v1520_v57 = vld [vmem:[%s2312_s6 + $0x60] sm:$0xff] }
 0x19f   :  { %v318_v61 = vmax.f32 %v308_v60, 0.0 }
 0x1a1   :  { %1729 = vmatprep.mubr.msk.f32.mxu0 %vm97_vm0, %v318_v61 }
 0x1a2   :  { %1730 = vmatmul.mubr.msk.f32.gmra.mxu0 %vm97_vm0, %v319_v62 }
 0x1a3   :  { %1751 = vmatprep.mubr.msk.f32.mxu0 %vm1903_vm1, %v1902_v63 }
 0x25e   :  { %v1728_v1 = vpop.f32.mrf.mxu0 }
 0x25f   :  { %v408_v6 = vadd.f32 %v1728_v1, %v323_v2 }
 0x260   :  { %v402_v3 = vpop.f32.mrf.mxu0 }
 0x261   :  { %v403_v4 = vadd.f32 %v402_v3, %v323_v2  ;;  %v422_v11 = vsel %vm97_vm0, %v408_v6, -inf  ;;  %v1539_v3 = vld [vmem:[%s2312_s6 + $0xf8] sm:$0xff] }
 0x262   :  { %v1731_v5 = vpop.f32.mrf.mxu0 }
 0x263   :  { %v418_v7 = vadd.f32 %v1731_v5, %v323_v2  ;;  %v421_v9 = vsel %vm97_vm0, %v403_v4, -inf  ;;  %v1537_v5 = vld [vmem:[%s2312_s6 + $0xe8] sm:$0xff] }
 0x264   :  { %v412_v8 = vpop.f32.mrf.mxu0  ;;  %v425_v16 = vmax.f32 %v421_v9, %v422_v11 }
 0x265   :  { %v413_v10 = vadd.f32 %v412_v8, %v323_v2  ;;  %v424_v12 = vsel %vm97_vm0, %v418_v7, -inf }
 0x267   :  { %v423_v14 = vsel %vm97_vm0, %v413_v10, -inf }
 0x268   :  { %v426_v17 = vmax.f32 %v423_v14, %v424_v12 }
 0x26a   :  { %v427_v18 = vmax.f32 %v425_v16, %v426_v17 }
 0x26c   :  { %v428_v19 = vrot.slane %v427_v18, 4 }
 0x26e   :  { %v429_v20 = vmax.f32 %v427_v18, %v428_v19 }
 0x270   :  { %v430_v21 = vrot.slane %v429_v20, 2 }
 0x272   :  { %v431_v22 = vmax.f32 %v429_v20, %v430_v21 }
 0x274   :  { %v432_v23 = vrot.slane %v431_v22, 1 }
 0x276   :  { %v433_v24 = vmax.f32 %v431_v22, %v432_v23 }
 0x278   :  { %v436_v25 = vsub.f32 %v413_v10, %v433_v24  ;;  %v437_v26 = vsub.f32 %v418_v7, %v433_v24  ;;  %v435_v28 = vsub.f32 %v408_v6, %v433_v24  ;;  %v434_v31 = vsub.f32 %v403_v4, %v433_v24  ;;  %v1538_v4 = vld [vmem:[%s2312_s6 + $0xf0] sm:$0xff]  ;;  %v1536_v6 = vld [vmem:[%s2312_s6 + $0xe0] sm:$0xff] }
 0x279   :  { %v745_v7 = vsub.s32 3, %v1989_v13 }
 0x27a   :  { %v442_v29 = vmul.f32 1.442695, %v436_v25  ;;  %v444_v32 = vmul.f32 1.442695, %v437_v26  ;;  %v440_v33 = vmul.f32 1.442695, %v435_v28 }
 0x27b   :  { %v438_v34 = vmul.f32 1.442695, %v434_v31  ;;  %v746_v9 = vrot.slane %v1995_v15, %v745_v7  ;;  %v1551_v26 = vld [vmem:[%s2312_s6 + $0x158] sm:$0xff]  ;;  %v1550_v28 = vld [vmem:[%s2312_s6 + $0x150] sm:$0xff]  ;;  %v1548_v31 = vld [vmem:[%s2312_s6 + $0x140] sm:$0xff] }
 0x27c   :  { %1872 = vpow2.f32 %v442_v29  ;;  %v1549_v29 = vld [vmem:[%s2312_s6 + $0x148] sm:$0xff] }
 0x27d   :  { %1874 = vpow2.f32 %v444_v32  ;;  %v1535_v32 = vld [vmem:[%s2312_s6 + $0xd8] sm:$0xff] }
 0x27e   :  { %1876 = vpow2.f32 %v440_v33  ;;  %v1534_v33 = vld [vmem:[%s2312_s6 + $0xd0] sm:$0xff] }
 0x27f   :  { %1878 = vpow2.f32 %v438_v34  ;;  %v1533_v34 = vld [vmem:[%s2312_s6 + $0xc8] sm:$0xff] }
 0x289   :  { %v1873_v35 = vpop.eup %1872 }
 0x28a   :  { %v1875_v36 = vpop.eup %1874  ;;  %v521_v45 = vmul.f32 %v1873_v35, %v2041_v43 }
 0x28b   :  { %1733 = vmatpush3.msra.mxu1 %v1875_v36  ;;  %v522_v40 = vmul.f32 %v1875_v36, %v2044_v44  ;;  %v1877_v42 = vpop.eup %1876  ;;  %v1546_v36 = vld [vmem:[%s2312_s6 + $0x130] sm:$0xff] }
 0x28c   :  { %1734 = vmatprep.subr.mxu1 %v1902_v63  ;;  %v1879_v46 = vpop.eup %1878  ;;  %v520_v47 = vmul.f32 %v1877_v42, %v2026_v39 }
 0x28d   :  { %1735 = vmatpush3.msra.mxu1 %v1873_v35  ;;  %1744 = vmatpush3.msra.mxu0 %v522_v40  ;;  %v519_v49 = vmul.f32 %v1879_v46, %v2021_v37  ;;  %v1547_v35 = vld [vmem:[%s2312_s6 + $0x138] sm:$0xff]  ;;  %v1545_v40 = vld [vmem:[%s2312_s6 + $0x128] sm:$0xff] }
 0x28e   :  { %1736 = vmatprep.subr.mxu1 %v1902_v63  ;;  %1745 = vmatprep.subr.mxu0 %v1902_v63 }
 0x28f   :  { %1737 = vmatpush3.msra.mxu1 %v1877_v42  ;;  %1746 = vmatpush3.msra.mxu0 %v521_v45  ;;  %v1544_v42 = vld [vmem:[%s2312_s6 + $0x120] sm:$0xff] }
 0x290   :  { %1738 = vmatprep.subr.mxu1 %v1902_v63  ;;  %1747 = vmatprep.subr.mxu0 %v1902_v63  ;;  %v34_v45 = vld [vmem:[%s2319_s5] sm:$0xff] }
 0x291   :  { %1739 = vmatpush3.msra.mxu1 %v1879_v46  ;;  %1748 = vmatpush3.msra.mxu0 %v520_v47 }
 0x292   :  { %1741 = vmatmul.mubr.msk.f32.vlgmr.msra.gmra.mxu1 %vm97_vm0, %v33_v48  ;;  %1749 = vmatprep.subr.mxu0 %v1902_v63 }
 0x293   :  { %1750 = vmatpush3.msra.mxu0 %v519_v49  ;;  %1754 = vmatprep.subr.mxu1 %v1902_v63 }
 0x294   :  { %1752 = vmatmul.mubr.msk.f32.vlgmr.msra.gmra.mxu0 %vm97_vm0, %v33_v48  ;;  %1765 = vmatprep.subr.mxu0 %v1902_v63  ;;  %v1531_v48 = vld [vmem:[%s2312_s6 + $0xb8] sm:$0xff] }
 0x295   :  { %1762 = vmatprep.mubr.msk.f32.mxu1 %vm1903_vm1, %v1902_v63  ;;  %1773 = vmatprep.mubr.msk.f32.mxu0 %vm1903_vm1, %v1902_v63 }
 0x296   :  { %1755 = vmatpush3.msra.mxu1 %v1527_v50  ;;  %1766 = vmatpush3.msra.mxu0 %v1523_v52  ;;  %v1530_v50 = vld [vmem:[%s2312_s6 + $0xb0] sm:$0xff]  ;;  %v1528_v52 = vld [vmem:[%s2312_s6 + $0xa0] sm:$0xff] }
 0x297   :  { %1756 = vmatprep.subr.mxu1 %v1902_v63  ;;  %1767 = vmatprep.subr.mxu0 %v1902_v63 }
 0x298   :  { %1757 = vmatpush3.msra.mxu1 %v1526_v51  ;;  %1768 = vmatpush3.msra.mxu0 %v1522_v54  ;;  %v1529_v51 = vld [vmem:[%s2312_s6 + $0xa8] sm:$0xff]  ;;  %v1542_v54 = vld [vmem:[%s2312_s6 + $0x110] sm:$0xff] }
 0x299   :  { %1758 = vmatprep.subr.mxu1 %v1902_v63  ;;  %1769 = vmatprep.subr.mxu0 %v1902_v63 }
 0x29a   :  { %1759 = vmatpush3.msra.mxu1 %v1525_v53  ;;  %1770 = vmatpush3.msra.mxu0 %v1521_v56  ;;  %v1543_v53 = vld [vmem:[%s2312_s6 + $0x118] sm:$0xff]  ;;  %v1540_v56 = vld [vmem:[%s2312_s6 + $0x100] sm:$0xff] }
 0x29b   :  { %1760 = vmatprep.subr.mxu1 %v1902_v63  ;;  %1771 = vmatprep.subr.mxu0 %v1902_v63 }
 0x29c   :  { %1761 = vmatpush3.msra.mxu1 %v1524_v55  ;;  %1772 = vmatpush3.msra.mxu0 %v1520_v57  ;;  %v1541_v55 = vld [vmem:[%s2312_s6 + $0x108] sm:$0xff] }
 0x29d   :  { %1776 = vmatprep.subr.mxu1 %v1902_v63 }
 0x352   :  { %v515_v58 = vpop.f32.mrf.mxu1 }
 0x353   :  { %1880 = vrcp.f32 %v515_v58 }
 0x354   :  { %v1742_v59 = vpop.f32.mrf.mxu1  ;;  %v589_v60 = vpop.f32.mrf.mxu0 }
 0x356   :  { %v1753_v61 = vpop.f32.mrf.mxu0 }
 0x360   :  { %v1881_v62 = vpop.eup %1880 }
 0x361   :  { %v594_v1 = vmul.f32 %v1881_v62, %v589_v60 }
 0x363   :  { %v596_v2 = vmul.f32 %v595_v0, %v594_v1  ;;  %1763 = vmatmul.mubr.msk.f32.vlgmr.msra.gmra.mxu1 %vm97_vm0, %v594_v1 }
 0x364   :  { %1784 = vmatprep.mubr.msk.f32.mxu1 %vm1903_vm1, %v1902_v63  ;;  %1777 = vmatpush3.msra.mxu1 %v1539_v3 }
 0x365   :  { %1774 = vmatmul.mubr.msk.f32.vlgmr.msra.gmra.mxu0 %vm97_vm0, %v596_v2  ;;  %1778 = vmatprep.subr.mxu1 %v1902_v63 }
 0x366   :  { %1779 = vmatpush3.msra.mxu1 %v1538_v4  ;;  %1789 = vmatprep.mubr.msk.f32.mxu0 %vm831_vm2, %v34_v45 }
 0x367   :  { %1780 = vmatprep.subr.mxu1 %v1902_v63 }
 0x368   :  { %1781 = vmatpush3.msra.mxu1 %v1537_v5 }
 0x369   :  { %1782 = vmatprep.subr.mxu1 %v1902_v63 }
 0x36a   :  { %1783 = vmatpush3.msra.mxu1 %v1536_v6 }
 0x36b   :  { %1795 = vmatprep.subr.mxu1 %v1902_v63 }
 0x423   :  { %v666_v8 = vpop.f32.mrf.mxu1 }
 0x425   :  { %v1764_v10 = vpop.f32.mrf.mxu1  ;;  %v739_v11 = vpop.f32.mrf.mxu0 }
 0x426   :  { %v740_v12 = vadd.f32 %v739_v11, %v666_v8  ;;  %v1458_v10 = vsub.s32 5, %v1989_v13 }
 0x427   :  { %v1775_v14 = vpop.f32.mrf.mxu0 }
 0x428   :  { %v747_v16 = vadd.f32 %v746_v9, %v740_v12 }
 0x42a   :  { %v748_v17 = vsub.f32 0.0, %v747_v16 }
 0x42c   :  { %v749_v18 = vmul.f32 1.442695, %v748_v17  ;;  %v1459_v17 = vrot.slane %v1995_v15, %v1458_v10 }
 0x42e   :  { %1882 = vpow2.f32 %v749_v18 }
 0x43b   :  { %v1883_v19 = vpop.eup %1882 }
 0x43c   :  { %v751_v20 = vadd.f32 1.0, %v1883_v19 }
 0x43e   :  { %1884 = vrcp.f32 %v751_v20 }
 0x44b   :  { %v1885_v21 = vpop.eup %1884 }
 0x44c   :  { %v755_v22 = vsub.f32 1.0, %v1885_v21  ;;  %v754_v23 = vmul.f32 %v1885_v21, %v596_v2 }
 0x44e   :  { %v756_v24 = vmul.f32 %v755_v22, %v594_v1 }
 0x450   :  { %v757_v25 = vadd.f32 %v756_v24, %v754_v23 }
 0x452   :  { %1785 = vmatmul.mubr.msk.f32.vlgmr.msra.gmra.mxu1 %vm97_vm0, %v757_v25 }
 0x453   :  { %1796 = vmatpush3.msra.mxu1 %v1551_v26  ;;  %1803 = vmatprep.mubr.msk.f32.mxu1 %vm1903_vm1, %v1902_v63 }
 0x454   :  { %1797 = vmatprep.subr.mxu1 %v1902_v63 }
 0x455   :  { %1798 = vmatpush3.msra.mxu1 %v1550_v28 }
 0x456   :  { %1799 = vmatprep.subr.mxu1 %v1902_v63 }
 0x457   :  { %1800 = vmatpush3.msra.mxu1 %v1549_v29 }
 0x458   :  { %1801 = vmatprep.subr.mxu1 %v1902_v63  ;;  %v1532_v63 = vld [vmem:[%s2312_s6 + $0xc0] sm:$0xff] }
 0x459   :  { %1802 = vmatpush3.msra.mxu1 %v1548_v31 }
 0x45a   :  { %1804 = vmatmul.mubr.msk.f32.vlgmr.msra.gmra.mxu1 %vm97_vm0, %v757_v25  ;;  %1814 = vmatprep.subr.mxu1 %v1535_v32 }
 0x45b   :  { %1815 = vmatpush3.msra.mxu1 %v1535_v32  ;;  %1822 = vmatprep.mubr.msk.f32.mxu1 %vm97_vm0, %v2021_v37 }
 0x45c   :  { %1816 = vmatprep.subr.mxu1 %v1534_v33 }
 0x45d   :  { %1817 = vmatpush3.msra.mxu1 %v1534_v33 }
 0x45e   :  { %1818 = vmatprep.subr.mxu1 %v1533_v34 }
 0x45f   :  { %1819 = vmatpush3.msra.mxu1 %v1533_v34 }
 0x460   :  { %1820 = vmatprep.subr.mxu1 %v1532_v63 }
 0x461   :  { %1821 = vmatpush3.msra.mxu1 %v1532_v63 }
 0x462   :  { %1823 = vmatmul.mubr.msk.f32.vlgmr.msra.gmra.mxu1 %vm97_vm0, %v2026_v39  ;;  %1842 = vmatprep.subr.mxu1 %v1547_v35 }
 0x463   :  { %1825 = vmatprep.mubr.msk.f32.mxu1 %vm97_vm0, %v2041_v43  ;;  %1843 = vmatpush3.msra.mxu1 %v1547_v35 }
 0x464   :  { %1844 = vmatprep.subr.mxu1 %v1546_v36 }
 0x465   :  { %1845 = vmatpush3.msra.mxu1 %v1546_v36 }
 0x466   :  { %1826 = vmatmul.mubr.msk.f32.gmra.mxu1 %vm97_vm0, %v2044_v44  ;;  %1846 = vmatprep.subr.mxu1 %v1545_v40 }
 0x467   :  { %1847 = vmatpush3.msra.mxu1 %v1545_v40  ;;  %1850 = vmatprep.mubr.msk.f32.mxu1 %vm97_vm0, %v2021_v37  ;;  %v35_v37 = vld [vmem:[%s2319_s5 + $0x8] sm:$0xff] }
 0x468   :  { %1848 = vmatprep.subr.mxu1 %v1544_v42 }
 0x469   :  { %1849 = vmatpush3.msra.mxu1 %v1544_v42 }
 0x46a   :  { %1851 = vmatmul.mubr.msk.f32.vlgmr.msra.gmra.mxu1 %vm97_vm0, %v2026_v39  ;;  %v36_v39 = vld [vmem:[%s2319_s5 + $0x10] sm:$0xff] }
 0x46b   :  { %1853 = vmatprep.mubr.msk.f32.mxu1 %vm97_vm0, %v2041_v43 }
 0x46e   :  { %1854 = vmatmul.mubr.msk.f32.gmra.mxu1 %vm97_vm0, %v2044_v44  ;;  %v37_v44 = vld [vmem:[%s2319_s5 + $0x18] sm:$0xff] }
 0x512   :  { %v827_v46 = vpop.f32.mrf.mxu1 }
 0x513   :  { %1787 = vmatprep.subr.mxu0 %v827_v46 }
 0x514   :  { %v1786_v43 = vpop.f32.mrf.mxu1  ;;  %1788 = vmatpush3.msra.mxu0 %v827_v46 }
 0x515   :  { %1790 = vmatmul.mubr.msk.f32.vlgmr.msra.gmra.mxu0 %vm831_vm2, %v35_v37 }
 0x516   :  { %1792 = vmatprep.mubr.msk.f32.mxu0 %vm831_vm2, %v36_v39 }
 0x519   :  { %1793 = vmatmul.mubr.msk.f32.gmra.mxu0 %vm831_vm2, %v37_v44 }
 0x51a   :  { %v995_v47 = vpop.f32.mrf.mxu1  ;;  %1808 = vmatprep.mubr.msk.f32.mxu0 %vm831_vm2, %v34_v45 }
 0x51b   :  { %1806 = vmatprep.subr.mxu0 %v995_v47 }
 0x51c   :  { %v1805_v49 = vpop.f32.mrf.mxu1  ;;  %1807 = vmatpush3.msra.mxu0 %v995_v47 }
 0x51d   :  { %1809 = vmatmul.mubr.msk.f32.vlgmr.msra.gmra.mxu0 %vm831_vm2, %v35_v37  ;;  %1828 = vmatprep.subr.mxu0 %v1531_v48 }
 0x51e   :  { %1829 = vmatpush3.msra.mxu0 %v1531_v48  ;;  %1811 = vmatprep.mubr.msk.f32.mxu0 %vm831_vm2, %v36_v39 }
 0x51f   :  { %1830 = vmatprep.subr.mxu0 %v1530_v50 }
 0x520   :  { %1831 = vmatpush3.msra.mxu0 %v1530_v50 }
 0x521   :  { %1812 = vmatmul.mubr.msk.f32.gmra.mxu0 %vm831_vm2, %v37_v44  ;;  %1832 = vmatprep.subr.mxu0 %v1529_v51 }
 0x522   :  { %1833 = vmatpush3.msra.mxu0 %v1529_v51  ;;  %1836 = vmatprep.mubr.msk.f32.mxu0 %vm97_vm0, %v2009_v30  ;;  %v1824_v58 = vpop.f32.mrf.mxu1  ;;  %v1272_v51 = vsub.s32 4, %v1989_v13 }
 0x523   :  { %1834 = vmatprep.subr.mxu0 %v1528_v52 }
 0x524   :  { %1835 = vmatpush3.msra.mxu0 %v1528_v52  ;;  %v1150_v61 = vpop.f32.mrf.mxu1 }
 0x525   :  { %1837 = vmatmul.mubr.msk.f32.vlgmr.msra.gmra.mxu0 %vm97_vm0, %v2004_v27  ;;  %1856 = vmatprep.subr.mxu0 %v1543_v53 }
 0x526   :  { %1839 = vmatprep.mubr.msk.f32.mxu0 %vm97_vm0, %v2031_v41  ;;  %1857 = vmatpush3.msra.mxu0 %v1543_v53  ;;  %v1827_v1 = vpop.f32.mrf.mxu1 }
 0x527   :  { %1858 = vmatprep.subr.mxu0 %v1542_v54 }
 0x528   :  { %1859 = vmatpush3.msra.mxu0 %v1542_v54  ;;  %v1160_v4 = vpop.f32.mrf.mxu1 }
 0x529   :  { %1840 = vmatmul.mubr.msk.f32.gmra.mxu0 %vm97_vm0, %v2023_v38  ;;  %1860 = vmatprep.subr.mxu0 %v1541_v55 }
 0x52a   :  { %1861 = vmatpush3.msra.mxu0 %v1541_v55  ;;  %1864 = vmatprep.mubr.msk.f32.mxu0 %vm97_vm0, %v2009_v30  ;;  %v1852_v7 = vpop.f32.mrf.mxu1 }
 0x52b   :  { %1862 = vmatprep.subr.mxu0 %v1540_v56 }
 0x52c   :  { %1863 = vmatpush3.msra.mxu0 %v1540_v56  ;;  %v1348_v11 = vpop.f32.mrf.mxu1 }
 0x52d   :  { %1865 = vmatmul.mubr.msk.f32.vlgmr.msra.gmra.mxu0 %vm97_vm0, %v2004_v27 }
 0x52e   :  { %1867 = vmatprep.mubr.msk.f32.mxu0 %vm97_vm0, %v2031_v41  ;;  %v1855_v18 = vpop.f32.mrf.mxu1 }
 0x530   :  { %v1358_v26 = vpop.f32.mrf.mxu1 }
 0x531   :  { %1868 = vmatmul.mubr.msk.f32.gmra.mxu0 %vm97_vm0, %v2023_v38 }
 0x5d5   :  { %v2276_v57 = vpop.f32.mrf.mxu0 }
 0x5d7   :  { %v2278_v59 = vpop.f32.mrf.mxu0 }
 0x5d9   :  { %v2280_v60 = vpop.f32.mrf.mxu0 }
 0x5db   :  { %v2282_v62 = vpop.f32.mrf.mxu0 }
 0x5dd   :  { %v1810_v0 = vpop.f32.mrf.mxu0 }
 0x5df   :  { %v1065_v2 = vpop.f32.mrf.mxu0 }
 0x5e1   :  { %v1813_v3 = vpop.f32.mrf.mxu0 }
 0x5e3   :  { %v1075_v5 = vpop.f32.mrf.mxu0 }
 0x5e5   :  { %v1838_v6 = vpop.f32.mrf.mxu0 }
 0x5e6   :  { %v1253_v50 = vadd.f32 %v1838_v6, %v1824_v58 }
 0x5e7   :  { %v1247_v8 = vpop.f32.mrf.mxu0 }
 0x5e8   :  { %v1248_v54 = vadd.f32 %v1247_v8, %v1150_v61 }
 0x5e9   :  { %v1841_v9 = vpop.f32.mrf.mxu0 }
 0x5ea   :  { %v1263_v56 = vadd.f32 %v1841_v9, %v1827_v1 }
 0x5eb   :  { %v1257_v12 = vpop.f32.mrf.mxu0 }
 0x5ed   :  { %v1866_v14 = vpop.f32.mrf.mxu0 }
 0x5ee   :  { %v1439_v16 = vadd.f32 %v1866_v14, %v1852_v7  ;;  %v1269_v7 = vadd.f32 %v2280_v60, %v1263_v56 }
 0x5ef   :  { %v1433_v19 = vpop.f32.mrf.mxu0 }
 0x5f0   :  { %v1453_v20 = vadd.f32 %v1810_v0, %v1439_v16  ;;  %v1434_v21 = vadd.f32 %v1433_v19, %v1348_v11  ;;  %v1267_v0 = vadd.f32 %v2276_v57, %v1253_v50 }
 0x5f1   :  { %v1869_v22 = vpop.f32.mrf.mxu0 }
 0x5f2   :  { %v1461_v23 = vadd.f32 %v1459_v17, %v1453_v20  ;;  %v1452_v24 = vadd.f32 %v1434_v21, %v1065_v2  ;;  %v1449_v25 = vadd.f32 %v1869_v22, %v1855_v18  ;;  %v1273_v2 = vrot.slane %v1995_v15, %v1272_v51 }
 0x5f3   :  { %v1443_v28 = vpop.f32.mrf.mxu0 }
 0x5f4   :  { %v1465_v29 = vsub.f32 0.0, %v1461_v23  ;;  %v1460_v31 = vadd.f32 %v1459_v17, %v1452_v24  ;;  %v1455_v32 = vadd.f32 %v1813_v3, %v1449_v25  ;;  %v1444_v33 = vadd.f32 %v1443_v28, %v1358_v26 }
 0x5f5   :  { %v1258_v3 = vadd.f32 %v1257_v12, %v1160_v4  ;;  %v1275_v58 = vadd.f32 %v1273_v2, %v1267_v0  ;;  %v1277_v11 = vadd.f32 %v1273_v2, %v1269_v7 }
 0x5f6   :  { %v1470_v34 = vmul.f32 1.442695, %v1465_v29  ;;  %v1464_v63 = vsub.f32 0.0, %v1460_v31  ;;  %v1463_v35 = vadd.f32 %v1459_v17, %v1455_v32  ;;  %v1454_v36 = vadd.f32 %v1444_v33, %v1075_v5 }
 0x5f7   :  { %v1266_v5 = vadd.f32 %v1248_v54, %v2278_v59  ;;  %v1268_v13 = vadd.f32 %v1258_v3, %v2282_v62  ;;  %v1279_v61 = vmax.f32 %v1275_v58, 0.0  ;;  %v1281_v12 = vmax.f32 %v1277_v11, 0.0 }
 0x5f8   :  { %1886 = vpow2.f32 %v1470_v34  ;;  %v1468_v40 = vmul.f32 1.442695, %v1464_v63  ;;  %v1467_v42 = vsub.f32 0.0, %v1463_v35  ;;  %v1462_v45 = vadd.f32 %v1459_v17, %v1454_v36 }
 0x5f9   :  { %v1274_v6 = vadd.f32 %v1273_v2, %v1266_v5  ;;  %v1276_v1 = vadd.f32 %v1273_v2, %v1268_v13 }
 0x5fa   :  { %1888 = vpow2.f32 %v1468_v40  ;;  %v1474_v46 = vmul.f32 1.442695, %v1467_v42  ;;  %v1466_v37 = vsub.f32 0.0, %v1462_v45 }
 0x5fb   :  { %v1278_v9 = vmax.f32 %v1274_v6, 0.0  ;;  %v1280_v19 = vmax.f32 %v1276_v1, 0.0 }
 0x5fc   :  { %1890 = vpow2.f32 %v1474_v46  ;;  %v1472_v39 = vmul.f32 1.442695, %v1466_v37 }
 0x5fe   :  { %1892 = vpow2.f32 %v1472_v39 }
 0x605   :  { %v1887_v43 = vpop.eup %1886 }
 0x606   :  { %v1477_v44 = vadd.f32 1.0, %v1887_v43 }
 0x607   :  { %v1889_v47 = vpop.eup %1888 }
 0x608   :  { %1894 = vrcp.f32 %v1477_v44  ;;  %v1476_v48 = vadd.f32 1.0, %v1889_v47 }
 0x609   :  { %v1891_v49 = vpop.eup %1890 }
 0x60a   :  { %1896 = vrcp.f32 %v1476_v48  ;;  %v1479_v52 = vadd.f32 1.0, %v1891_v49 }
 0x60b   :  { %v1893_v53 = vpop.eup %1892 }
 0x60c   :  { %1898 = vrcp.f32 %v1479_v52  ;;  %v1478_v55 = vadd.f32 1.0, %v1893_v53 }
 0x60e   :  { %1900 = vrcp.f32 %v1478_v55 }
 0x615   :  { %v1895_v10 = vpop.eup %1894 }
 0x616   :  { %v1493_v8 = vsub.f32 1.0, %v1895_v10  ;;  %v1489_v57 = vmul.f32 %v1895_v10, %v1279_v61 }
 0x617   :  { %v1897_v14 = vpop.eup %1896 }
 0x618   :  { %v1497_v15 = vmul.f32 %v1493_v8, %v2004_v27  ;;  %v1492_v16 = vsub.f32 1.0, %v1897_v14  ;;  %v1488_v17 = vmul.f32 %v1897_v14, %v1278_v9 }
 0x619   :  { %v1899_v4 = vpop.eup %1898 }
 0x61a   :  { %v1501_v59 = vadd.f32 %v1497_v15, %v1489_v57  ;;  %v1496_v60 = vmul.f32 %v1492_v16, %v2009_v30  ;;  %v1495_v18 = vsub.f32 1.0, %v1899_v4  ;;  %v1491_v21 = vmul.f32 %v1899_v4, %v1281_v12 }
 0x61b   :  { %v1901_v62 = vpop.eup %1900 }
 0x61c   :  { %1505 = vst.msk [vmem:[%s2320_s8 + $0x8] sm:$0xff] %vm97_vm0, %v1501_v59  ;;  %v1500_v20 = vadd.f32 %v1496_v60, %v1488_v17  ;;  %v1499_v22 = vmul.f32 %v1495_v18, %v2023_v38  ;;  %v1494_v27 = vsub.f32 1.0, %v1901_v62  ;;  %v1490_v30 = vmul.f32 %v1901_v62, %v1280_v19 }
 0x61e   :  { %1504 = vst.msk [vmem:[%s2320_s8] sm:$0xff] %vm97_vm0, %v1500_v20  ;;  %v1503_v23 = vadd.f32 %v1499_v22, %v1491_v21  ;;  %v1498_v24 = vmul.f32 %v1494_v27, %v2031_v41 }
 0x620   :  { %1507 = vst.msk [vmem:[%s2320_s8 + $0x18] sm:$0xff] %vm97_vm0, %v1503_v23  ;;  %v1502_v25 = vadd.f32 %v1498_v24, %v1490_v30 }
 0x622   :  { %1506 = vst.msk [vmem:[%s2320_s8 + $0x10] sm:$0xff] %vm97_vm0, %v1502_v25 }

</bundles_post_ra>
